<compile_context>
chip_gen: v7x
topology: tpu7x:2x2x1
jax: 0.10.0
libtpu: 0.0.40
codegen_flags: <defaults>
</compile_context>

<pallas_src>
import functools
import math

import jax
import jax.numpy as jnp
from jax import lax
from jax.experimental import pallas as pl
from jax.experimental.pallas import tpu as pltpu


def _mha_kernel(q_ref, k_ref, v_ref, bias_ref,
                wq_ref, bq_ref, wk_ref, bk_ref, wv_ref, bv_ref,
                wo_ref, bo_ref,
                out_ref,
                *, n_heads, seq_len, zero_pad):
    M, D = q_ref.shape                      # M = batch_block * seq_len rows
    S = seq_len
    B = M // S
    d_k = D // n_heads
    scale = 1.0 / math.sqrt(d_k)

    # Fused full-width projections: (M, D) @ (D, D), bf16 MXU, f32 accumulate.
    Q = jnp.dot(q_ref[...], wq_ref[...], preferred_element_type=jnp.float32) + bq_ref[...]
    K = jnp.dot(k_ref[...], wk_ref[...], preferred_element_type=jnp.float32) + bk_ref[...]
    V = jnp.dot(v_ref[...], wv_ref[...], preferred_element_type=jnp.float32) + bv_ref[...]

    # Split back into sequences; fold 1/sqrt(d_k) into Q once (f32).
    Q3 = (Q * scale).reshape(B, S, D)
    K3 = K.reshape(B, S, D)
    V3 = V.reshape(B, S, D)

    bias2 = bias_ref[...]                   # (S, S) additive mask bias, f32

    # Per-head attention: only the small (S, S) score/softmax math stays in the
    # (static, fully unrolled) head loop — the heavy matmuls are fused above.
    ctx_heads = []
    for h in range(n_heads):
        lo = h * d_k
        Qh = Q3[:, :, lo:lo + d_k].astype(jnp.bfloat16)
        Kh = K3[:, :, lo:lo + d_k].astype(jnp.bfloat16)
        Vh = V3[:, :, lo:lo + d_k].astype(jnp.bfloat16)

        s = jnp.einsum("bqd,bkd->bqk", Qh, Kh,
                       preferred_element_type=jnp.float32) + bias2[None]
        m = jnp.max(s, axis=-1, keepdims=True)
        p = jnp.exp(s - m)
        denom = jnp.sum(p, axis=-1, keepdims=True)
        p = p * pl.reciprocal(denom, approx=True)   # divide on the EUP slot
        # TODO(synk): training-mode attention dropout (nn.Dropout) is not
        # implemented; this matches PyTorch eval mode (dropout == identity).
        ctx_heads.append(jnp.einsum("bqk,bkd->bqd", p.astype(jnp.bfloat16), Vh,
                                    preferred_element_type=jnp.float32))

    # Assemble heads and run the output projection as ONE (M, D) @ (D, D) dot.
    ctx = jnp.concatenate(ctx_heads, axis=-1).reshape(M, D).astype(jnp.bfloat16)
    out = jnp.dot(ctx, wo_ref[...], preferred_element_type=jnp.float32)

    if zero_pad:
        # Zeroing row 0 of every head's probability matrix == zeroing row 0 of
        # each sequence in (concat @ Wo); applied once here, before the output
        # bias is added (matches the PyTorch ordering).
        row_ids = lax.broadcasted_iota(jnp.int32, (M, 1), 0)
        out = jnp.where(row_ids % S == 0, jnp.float32(0.0), out)

    out = out + bo_ref[...]
    out_ref[...] = out.astype(out_ref.dtype)


def _vmem_capacity_bytes():
    """Physical per-core VMEM; conservative (v7x, 64 MiB) fallback."""
    try:
        return int(pltpu.get_tpu_info().vmem_capacity_bytes)
    except Exception:
        return 64 << 20


def _pick_batch_block(bs, seq, target_rows, min_steps=4):
    """Largest batch divisor whose tile fits target_rows, preferring at least
    `min_steps` grid steps (>= 2 steps per TensorCore on v7x) so the BlockSpec
    pipeline actually overlaps DMA with compute."""
    candidates = [b for b in range(1, bs + 1)
                  if bs % b == 0
                  and b * seq <= target_rows
                  and ((b * seq) % 8 == 0 or b == bs)]
    if not candidates:
        return 1
    for steps in (min_steps, 2, 1):
        ok = [b for b in candidates if bs // b >= steps]
        if ok:
            return max(ok)
    return max(candidates)


def multi_head_attention(q, k, v, mask, params, *, n_heads, zero_pad,
                         kq_same=False, batch_block=None):
    """q, k, v: (bs, S, d_model) f32; mask: (S, S), 1 = attend, 0 = masked.

    params = (wq, bq, wk, bk, wv, bv, wo, bo); weights stored (d_in, d_out)
    (pre-transposed from PyTorch Linear's (out, in)), biases (d_model,).
    Returns (bs, S, d_model) float32.
    """
    bs, S, D = q.shape
    assert D % n_heads == 0
    wq, bq, wk, bk, wv, bv, wo, bo = params
    if kq_same:                              # module reuses k_linear for q
        wq, bq = wk, bk

    # bf16 activations (halves input DMA) flattened to (bs*S, D) so each grid
    # step runs sublane-dense full-width MXU matmuls; math stays f32 in-kernel.
    q2 = q.reshape(bs * S, D).astype(jnp.bfloat16)
    k2 = k.reshape(bs * S, D).astype(jnp.bfloat16)
    v2 = v.reshape(bs * S, D).astype(jnp.bfloat16)

    wq_r = wq.astype(jnp.bfloat16)
    wk_r = wk.astype(jnp.bfloat16)
    wv_r = wv.astype(jnp.bfloat16)
    wo_r = wo.astype(jnp.bfloat16)
    bq_r = bq.reshape(1, D).astype(jnp.float32)
    bk_r = bk.reshape(1, D).astype(jnp.float32)
    bv_r = bv.reshape(1, D).astype(jnp.float32)
    bo_r = bo.reshape(1, D).astype(jnp.float32)

    # masked_fill(mask == 0, -1e32) as a precomputed additive f32 bias.
    # Precondition: every query row has >= 1 unmasked key (true for causal).
    mask_bias = jnp.where(mask == 0, jnp.float32(-1e32), jnp.float32(0.0))

    vmem_cap = _vmem_capacity_bytes()
    # Larger tiles on v5e/v6e (128 MiB VMEM) to amortize per-step overhead,
    # smaller on v7x (64 MiB).
    target_rows = 1024 if vmem_cap >= (100 << 20) else 512
    b_blk = batch_block if batch_block is not None else _pick_batch_block(bs, S, target_rows)
    assert bs % b_blk == 0
    grid = (bs // b_blk,)
    rows = b_blk * S

    batched = lambda i: (i, 0)
    const2d = lambda i: (0, 0)

    # VMEM budget: double-buffered tiles + resident constants + intermediates.
    act_in = 3 * 2 * rows * D * 2                         # q, k, v (bf16, x2 buf)
    act_out = 2 * rows * D * 4                            # out (f32, x2 buf)
    consts = 2 * (4 * D * D * 2 + 4 * D * 4 + S * S * 4)  # weights/biases/mask
    interm = (3 * rows * D * 4 + 3 * rows * D * 2         # Q/K/V f32 + bf16 slices
              + 3 * b_blk * S * S * 4                     # scores/probs temporaries
              + 2 * rows * D * 4)                         # ctx + out
    vmem_limit = int(min(max(1.5 * (act_in + act_out + consts + interm), 32 << 20),
                         0.75 * vmem_cap))

    kernel = functools.partial(_mha_kernel, n_heads=n_heads, seq_len=S,
                               zero_pad=zero_pad)

    out = pl.pallas_call(
        kernel,
        out_shape=jax.ShapeDtypeStruct((bs * S, D), jnp.float32),
        grid_spec=pltpu.PrefetchScalarGridSpec(
            num_scalar_prefetch=0,
            grid=grid,
            in_specs=[
                pl.BlockSpec((rows, D), batched),   # q (flattened rows)
                pl.BlockSpec((rows, D), batched),   # k
                pl.BlockSpec((rows, D), batched),   # v
                pl.BlockSpec((S, S), const2d),      # additive mask bias
                pl.BlockSpec((D, D), const2d),      # Wq
                pl.BlockSpec((1, D), const2d),      # bq
                pl.BlockSpec((D, D), const2d),      # Wk
                pl.BlockSpec((1, D), const2d),      # bk
                pl.BlockSpec((D, D), const2d),      # Wv
                pl.BlockSpec((1, D), const2d),      # bv
                pl.BlockSpec((D, D), const2d),      # Wo
                pl.BlockSpec((1, D), const2d),      # bo
            ],
            out_specs=pl.BlockSpec((rows, D), batched),
        ),
        compiler_params=pltpu.CompilerParams(
            dimension_semantics=("parallel",),
            vmem_limit_bytes=vmem_limit),
    )(q2, k2, v2, mask_bias, wq_r, bq_r, wk_r, bk_r, wv_r, bv_r, wo_r, bo_r)

    return out.reshape(bs, S, D)


def _xavier_uniform(key, fan_in, fan_out):
    bound = math.sqrt(6.0 / (fan_in + fan_out))
    # Stored as (d_in, d_out) so the kernel computes x @ W (== PyTorch x @ W^T).
    return jax.random.uniform(key, (fan_in, fan_out), jnp.float32, -bound, bound)


def _reference(q, k, v, mask, params, n_heads, zero_pad):
    """Pure-JAX f32 replica of the PyTorch forward, for correctness checking."""
    wq, bq, wk, bk, wv, bv, wo, bo = params
    bs, S, D = q.shape
    d_k = D // n_heads

    def proj(x, w, b):
        y = x @ w + b
        return y.reshape(bs, S, n_heads, d_k).transpose(0, 2, 1, 3)

    Q, K, V = proj(q, wq, bq), proj(k, wk, bk), proj(v, wv, bv)
    scores = jnp.einsum("bhqd,bhkd->bhqk", Q, K) / math.sqrt(d_k)
    scores = jnp.where(mask[None, None] == 0, -1e32, scores)
    scores = jax.nn.softmax(scores, axis=-1)
    if zero_pad:
        scores = scores.at[:, :, 0, :].set(0.0)
    out = jnp.einsum("bhqk,bhkd->bhqd", scores, V)
    concat = out.transpose(0, 2, 1, 3).reshape(bs, S, D)
    return concat @ wo + bo


if __name__ == "__main__":
    # Module config (kq_same=False -> separate q_linear), eval-mode dropout.
    bs, S, d_model, n_heads = 32, 8, 32, 4
    zero_pad = True

    key = jax.random.PRNGKey(0)
    kq, kk, kv, kqw, kkw, kvw, kow, kb = jax.random.split(key, 8)

    q = jax.random.normal(kq, (bs, S, d_model), jnp.float32)
    k = jax.random.normal(kk, (bs, S, d_model), jnp.float32)
    v = jax.random.normal(kv, (bs, S, d_model), jnp.float32)

    # Causal (no-peek) mask: 1 = attend, 0 = masked.
    mask = jnp.tril(jnp.ones((S, S), jnp.float32))

    # Deterministic xavier_uniform_ weights; small random biases to exercise
    # the bias paths (the module zero-inits them, but supports any values).
    bkeys = jax.random.split(kb, 4)
    biases = [0.1 * jax.random.normal(bkeys[i], (d_model,), jnp.float32)
              for i in range(4)]
    params = (
        _xavier_uniform(kqw, d_model, d_model), biases[0],
        _xavier_uniform(kkw, d_model, d_model), biases[1],
        _xavier_uniform(kvw, d_model, d_model), biases[2],
        _xavier_uniform(kow, d_model, d_model), biases[3],
    )

    out = multi_head_attention(q, k, v, mask, params,
                               n_heads=n_heads, zero_pad=zero_pad)
    out = jax.block_until_ready(out)

    ref = _reference(q, k, v, mask, params, n_heads, zero_pad)
    assert out.shape == (bs, S, d_model)
    max_err = float(jnp.max(jnp.abs(out - ref)))
    # bf16 activations/weights + approximate EUP reciprocal vs f32 reference.
    assert jnp.allclose(out, ref, atol=5e-2, rtol=5e-2), \
        f"mismatch vs reference (max abs err = {max_err})"

    print("KERNEL_OK")
</pallas_src>

<mosaic_0001>
module attributes {stable_mosaic.version = 11 : i64} {
  func.func @_mha_kernel(%arg0: i32, %arg1: memref<64x32xbf16, #tpu.memory_space<vmem>>, %arg2: memref<64x32xbf16, #tpu.memory_space<vmem>>, %arg3: memref<64x32xbf16, #tpu.memory_space<vmem>>, %arg4: memref<8x8xf32, #tpu.memory_space<vmem>>, %arg5: memref<32x32xbf16, #tpu.memory_space<vmem>>, %arg6: memref<1x32xf32, #tpu.memory_space<vmem>>, %arg7: memref<32x32xbf16, #tpu.memory_space<vmem>>, %arg8: memref<1x32xf32, #tpu.memory_space<vmem>>, %arg9: memref<32x32xbf16, #tpu.memory_space<vmem>>, %arg10: memref<1x32xf32, #tpu.memory_space<vmem>>, %arg11: memref<32x32xbf16, #tpu.memory_space<vmem>>, %arg12: memref<1x32xf32, #tpu.memory_space<vmem>>, %arg13: memref<64x32xf32, #tpu.memory_space<vmem>>) attributes {dimension_semantics = [#tpu.dimension_semantics<parallel>], iteration_bounds = array<i64: 4>, scalar_prefetch = 0 : i64, scratch_operands = 0 : i64, tpu.core_type = #tpu.core_type<tc>, window_params = [{transform_indices = @transform_0, window_bounds = array<i64: 64, 32>}, {transform_indices = @transform_1, window_bounds = array<i64: 64, 32>}, {transform_indices = @transform_2, window_bounds = array<i64: 64, 32>}, {pipeline_mode = #tpu.pipeline_mode<synchronous>, transform_indices = @transform_3, window_bounds = array<i64: 8, 8>}, {pipeline_mode = #tpu.pipeline_mode<synchronous>, transform_indices = @transform_4, window_bounds = array<i64: 32, 32>}, {pipeline_mode = #tpu.pipeline_mode<synchronous>, transform_indices = @transform_5, window_bounds = array<i64: 1, 32>}, {pipeline_mode = #tpu.pipeline_mode<synchronous>, transform_indices = @transform_6, window_bounds = array<i64: 32, 32>}, {pipeline_mode = #tpu.pipeline_mode<synchronous>, transform_indices = @transform_7, window_bounds = array<i64: 1, 32>}, {pipeline_mode = #tpu.pipeline_mode<synchronous>, transform_indices = @transform_8, window_bounds = array<i64: 32, 32>}, {pipeline_mode = #tpu.pipeline_mode<synchronous>, transform_indices = @transform_9, window_bounds = array<i64: 1, 32>}, {pipeline_mode = #tpu.pipeline_mode<synchronous>, transform_indices = @transform_10, window_bounds = array<i64: 32, 32>}, {pipeline_mode = #tpu.pipeline_mode<synchronous>, transform_indices = @transform_11, window_bounds = array<i64: 1, 32>}, {transform_indices = @transform_12, window_bounds = array<i64: 64, 32>}]} {
    %c0 = arith.constant 0 : index
    %c0_0 = arith.constant 0 : index
    %0 = vector.load %arg1[%c0, %c0_0] : memref<64x32xbf16, #tpu.memory_space<vmem>>, vector<64x32xbf16>
    %c0_1 = arith.constant 0 : index
    %c0_2 = arith.constant 0 : index
    %1 = vector.load %arg5[%c0_1, %c0_2] : memref<32x32xbf16, #tpu.memory_space<vmem>>, vector<32x32xbf16>
    %cst = arith.constant dense<0.000000e+00> : vector<64x32xf32>
    %2 = tpu.matmul %0, %1, %cst {dimension_numbers = #tpu.dot_dimension_numbers<[1], [0], [0], [1], [0, 0, 1, 1], [], []>} : vector<64x32xbf16>, vector<32x32xbf16>, vector<64x32xf32> -> vector<64x32xf32>
    %c0_3 = arith.constant 0 : index
    %c0_4 = arith.constant 0 : index
    %3 = vector.load %arg6[%c0_3, %c0_4] : memref<1x32xf32, #tpu.memory_space<vmem>>, vector<1x32xf32>
    %4 = vector.broadcast %3 : vector<1x32xf32> to vector<64x32xf32>
    %5 = arith.addf %2, %4 : vector<64x32xf32>
    %c0_5 = arith.constant 0 : index
    %c0_6 = arith.constant 0 : index
    %6 = vector.load %arg2[%c0_5, %c0_6] : memref<64x32xbf16, #tpu.memory_space<vmem>>, vector<64x32xbf16>
    %c0_7 = arith.constant 0 : index
    %c0_8 = arith.constant 0 : index
    %7 = vector.load %arg7[%c0_7, %c0_8] : memref<32x32xbf16, #tpu.memory_space<vmem>>, vector<32x32xbf16>
    %cst_9 = arith.constant dense<0.000000e+00> : vector<64x32xf32>
    %8 = tpu.matmul %6, %7, %cst_9 {dimension_numbers = #tpu.dot_dimension_numbers<[1], [0], [0], [1], [0, 0, 1, 1], [], []>} : vector<64x32xbf16>, vector<32x32xbf16>, vector<64x32xf32> -> vector<64x32xf32>
    %c0_10 = arith.constant 0 : index
    %c0_11 = arith.constant 0 : index
    %9 = vector.load %arg8[%c0_10, %c0_11] : memref<1x32xf32, #tpu.memory_space<vmem>>, vector<1x32xf32>
    %10 = vector.broadcast %9 : vector<1x32xf32> to vector<64x32xf32>
    %11 = arith.addf %8, %10 : vector<64x32xf32>
    %c0_12 = arith.constant 0 : index
    %c0_13 = arith.constant 0 : index
    %12 = vector.load %arg3[%c0_12, %c0_13] : memref<64x32xbf16, #tpu.memory_space<vmem>>, vector<64x32xbf16>
    %c0_14 = arith.constant 0 : index
    %c0_15 = arith.constant 0 : index
    %13 = vector.load %arg9[%c0_14, %c0_15] : memref<32x32xbf16, #tpu.memory_space<vmem>>, vector<32x32xbf16>
    %cst_16 = arith.constant dense<0.000000e+00> : vector<64x32xf32>
    %14 = tpu.matmul %12, %13, %cst_16 {dimension_numbers = #tpu.dot_dimension_numbers<[1], [0], [0], [1], [0, 0, 1, 1], [], []>} : vector<64x32xbf16>, vector<32x32xbf16>, vector<64x32xf32> -> vector<64x32xf32>
    %c0_17 = arith.constant 0 : index
    %c0_18 = arith.constant 0 : index
    %15 = vector.load %arg10[%c0_17, %c0_18] : memref<1x32xf32, #tpu.memory_space<vmem>>, vector<1x32xf32>
    %16 = vector.broadcast %15 : vector<1x32xf32> to vector<64x32xf32>
    %17 = arith.addf %14, %16 : vector<64x32xf32>
    %cst_19 = arith.constant 0.353553385 : f32
    %18 = vector.broadcast %cst_19 : f32 to vector<64x32xf32>
    %19 = arith.mulf %5, %18 : vector<64x32xf32>
    %20 = vector.shape_cast %19 : vector<64x32xf32> to vector<8x8x32xf32>
    %21 = vector.shape_cast %11 : vector<64x32xf32> to vector<8x8x32xf32>
    %22 = vector.shape_cast %17 : vector<64x32xf32> to vector<8x8x32xf32>
    %c0_20 = arith.constant 0 : index
    %c0_21 = arith.constant 0 : index
    %23 = vector.load %arg4[%c0_20, %c0_21] : memref<8x8xf32, #tpu.memory_space<vmem>>, vector<8x8xf32>
    %24 = vector.extract_strided_slice %20 {offsets = [0, 0, 0], sizes = [8, 8, 8], strides = [1, 1, 1]} : vector<8x8x32xf32> to vector<8x8x8xf32>
    %25 = arith.truncf %24 : vector<8x8x8xf32> to vector<8x8x8xbf16>
    %26 = vector.extract_strided_slice %21 {offsets = [0, 0, 0], sizes = [8, 8, 8], strides = [1, 1, 1]} : vector<8x8x32xf32> to vector<8x8x8xf32>
    %27 = arith.truncf %26 : vector<8x8x8xf32> to vector<8x8x8xbf16>
    %28 = vector.extract_strided_slice %22 {offsets = [0, 0, 0], sizes = [8, 8, 8], strides = [1, 1, 1]} : vector<8x8x32xf32> to vector<8x8x8xf32>
    %29 = arith.truncf %28 : vector<8x8x8xf32> to vector<8x8x8xbf16>
    "tpu.trace_start"() <{level = 10 : i32, message = "bqd,bkd->bqk"}> : () -> ()
    %cst_22 = arith.constant dense<0.000000e+00> : vector<8x8x8xf32>
    %30 = tpu.matmul %25, %27, %cst_22 {dimension_numbers = #tpu.dot_dimension_numbers<[2], [2], [1], [1], [0, 0, 0, 1, 1, 1], [0], [0]>} : vector<8x8x8xbf16>, vector<8x8x8xbf16>, vector<8x8x8xf32> -> vector<8x8x8xf32>
    "tpu.trace_stop"() : () -> ()
    %31 = vector.shape_cast %23 : vector<8x8xf32> to vector<1x8x8xf32>
    %32 = vector.broadcast %31 : vector<1x8x8xf32> to vector<8x8x8xf32>
    %33 = arith.addf %30, %32 : vector<8x8x8xf32>
    %cst_23 = arith.constant dense<0xFF800000> : vector<8x8xf32>
    %34 = vector.multi_reduction <maximumf>, %33, %cst_23 [2] : vector<8x8x8xf32> to vector<8x8xf32>
    %35 = vector.shape_cast %34 : vector<8x8xf32> to vector<8x8x1xf32>
    %36 = vector.broadcast %35 : vector<8x8x1xf32> to vector<8x8x8xf32>
    %37 = arith.subf %33, %36 : vector<8x8x8xf32>
    %38 = math.exp %37 : vector<8x8x8xf32>
    %cst_24 = arith.constant dense<0.000000e+00> : vector<8x8xf32>
    %39 = vector.multi_reduction <add>, %38, %cst_24 [2] : vector<8x8x8xf32> to vector<8x8xf32>
    %40 = vector.shape_cast %39 : vector<8x8xf32> to vector<8x8x1xf32>
    %41 = tpu.reciprocal %40 {approx = true} : vector<8x8x1xf32> -> vector<8x8x1xf32>
    %42 = vector.broadcast %41 : vector<8x8x1xf32> to vector<8x8x8xf32>
    %43 = arith.mulf %38, %42 : vector<8x8x8xf32>
    %44 = arith.truncf %43 : vector<8x8x8xf32> to vector<8x8x8xbf16>
    "tpu.trace_start"() <{level = 10 : i32, message = "bqk,bkd->bqd"}> : () -> ()
    %cst_25 = arith.constant dense<0.000000e+00> : vector<8x8x8xf32>
    %45 = tpu.matmul %44, %29, %cst_25 {dimension_numbers = #tpu.dot_dimension_numbers<[2], [1], [1], [2], [0, 0, 0, 1, 1, 2], [0], [0]>} : vector<8x8x8xbf16>, vector<8x8x8xbf16>, vector<8x8x8xf32> -> vector<8x8x8xf32>
    "tpu.trace_stop"() : () -> ()
    %46 = vector.extract_strided_slice %20 {offsets = [0, 0, 8], sizes = [8, 8, 8], strides = [1, 1, 1]} : vector<8x8x32xf32> to vector<8x8x8xf32>
    %47 = arith.truncf %46 : vector<8x8x8xf32> to vector<8x8x8xbf16>
    %48 = vector.extract_strided_slice %21 {offsets = [0, 0, 8], sizes = [8, 8, 8], strides = [1, 1, 1]} : vector<8x8x32xf32> to vector<8x8x8xf32>
    %49 = arith.truncf %48 : vector<8x8x8xf32> to vector<8x8x8xbf16>
    %50 = vector.extract_strided_slice %22 {offsets = [0, 0, 8], sizes = [8, 8, 8], strides = [1, 1, 1]} : vector<8x8x32xf32> to vector<8x8x8xf32>
    %51 = arith.truncf %50 : vector<8x8x8xf32> to vector<8x8x8xbf16>
    "tpu.trace_start"() <{level = 10 : i32, message = "bqd,bkd->bqk"}> : () -> ()
    %cst_26 = arith.constant dense<0.000000e+00> : vector<8x8x8xf32>
    %52 = tpu.matmul %47, %49, %cst_26 {dimension_numbers = #tpu.dot_dimension_numbers<[2], [2], [1], [1], [0, 0, 0, 1, 1, 1], [0], [0]>} : vector<8x8x8xbf16>, vector<8x8x8xbf16>, vector<8x8x8xf32> -> vector<8x8x8xf32>
    "tpu.trace_stop"() : () -> ()
    %53 = vector.shape_cast %23 : vector<8x8xf32> to vector<1x8x8xf32>
    %54 = vector.broadcast %53 : vector<1x8x8xf32> to vector<8x8x8xf32>
    %55 = arith.addf %52, %54 : vector<8x8x8xf32>
    %cst_27 = arith.constant dense<0xFF800000> : vector<8x8xf32>
    %56 = vector.multi_reduction <maximumf>, %55, %cst_27 [2] : vector<8x8x8xf32> to vector<8x8xf32>
    %57 = vector.shape_cast %56 : vector<8x8xf32> to vector<8x8x1xf32>
    %58 = vector.broadcast %57 : vector<8x8x1xf32> to vector<8x8x8xf32>
    %59 = arith.subf %55, %58 : vector<8x8x8xf32>
    %60 = math.exp %59 : vector<8x8x8xf32>
    %cst_28 = arith.constant dense<0.000000e+00> : vector<8x8xf32>
    %61 = vector.multi_reduction <add>, %60, %cst_28 [2] : vector<8x8x8xf32> to vector<8x8xf32>
    %62 = vector.shape_cast %61 : vector<8x8xf32> to vector<8x8x1xf32>
    %63 = tpu.reciprocal %62 {approx = true} : vector<8x8x1xf32> -> vector<8x8x1xf32>
    %64 = vector.broadcast %63 : vector<8x8x1xf32> to vector<8x8x8xf32>
    %65 = arith.mulf %60, %64 : vector<8x8x8xf32>
    %66 = arith.truncf %65 : vector<8x8x8xf32> to vector<8x8x8xbf16>
    "tpu.trace_start"() <{level = 10 : i32, message = "bqk,bkd->bqd"}> : () -> ()
    %cst_29 = arith.constant dense<0.000000e+00> : vector<8x8x8xf32>
    %67 = tpu.matmul %66, %51, %cst_29 {dimension_numbers = #tpu.dot_dimension_numbers<[2], [1], [1], [2], [0, 0, 0, 1, 1, 2], [0], [0]>} : vector<8x8x8xbf16>, vector<8x8x8xbf16>, vector<8x8x8xf32> -> vector<8x8x8xf32>
    "tpu.trace_stop"() : () -> ()
    %68 = vector.extract_strided_slice %20 {offsets = [0, 0, 16], sizes = [8, 8, 8], strides = [1, 1, 1]} : vector<8x8x32xf32> to vector<8x8x8xf32>
    %69 = arith.truncf %68 : vector<8x8x8xf32> to vector<8x8x8xbf16>
    %70 = vector.extract_strided_slice %21 {offsets = [0, 0, 16], sizes = [8, 8, 8], strides = [1, 1, 1]} : vector<8x8x32xf32> to vector<8x8x8xf32>
    %71 = arith.truncf %70 : vector<8x8x8xf32> to vector<8x8x8xbf16>
    %72 = vector.extract_strided_slice %22 {offsets = [0, 0, 16], sizes = [8, 8, 8], strides = [1, 1, 1]} : vector<8x8x32xf32> to vector<8x8x8xf32>
    %73 = arith.truncf %72 : vector<8x8x8xf32> to vector<8x8x8xbf16>
    "tpu.trace_start"() <{level = 10 : i32, message = "bqd,bkd->bqk"}> : () -> ()
    %cst_30 = arith.constant dense<0.000000e+00> : vector<8x8x8xf32>
    %74 = tpu.matmul %69, %71, %cst_30 {dimension_numbers = #tpu.dot_dimension_numbers<[2], [2], [1], [1], [0, 0, 0, 1, 1, 1], [0], [0]>} : vector<8x8x8xbf16>, vector<8x8x8xbf16>, vector<8x8x8xf32> -> vector<8x8x8xf32>
    "tpu.trace_stop"() : () -> ()
    %75 = vector.shape_cast %23 : vector<8x8xf32> to vector<1x8x8xf32>
    %76 = vector.broadcast %75 : vector<1x8x8xf32> to vector<8x8x8xf32>
    %77 = arith.addf %74, %76 : vector<8x8x8xf32>
    %cst_31 = arith.constant dense<0xFF800000> : vector<8x8xf32>
    %78 = vector.multi_reduction <maximumf>, %77, %cst_31 [2] : vector<8x8x8xf32> to vector<8x8xf32>
    %79 = vector.shape_cast %78 : vector<8x8xf32> to vector<8x8x1xf32>
    %80 = vector.broadcast %79 : vector<8x8x1xf32> to vector<8x8x8xf32>
    %81 = arith.subf %77, %80 : vector<8x8x8xf32>
    %82 = math.exp %81 : vector<8x8x8xf32>
    %cst_32 = arith.constant dense<0.000000e+00> : vector<8x8xf32>
    %83 = vector.multi_reduction <add>, %82, %cst_32 [2] : vector<8x8x8xf32> to vector<8x8xf32>
    %84 = vector.shape_cast %83 : vector<8x8xf32> to vector<8x8x1xf32>
    %85 = tpu.reciprocal %84 {approx = true} : vector<8x8x1xf32> -> vector<8x8x1xf32>
    %86 = vector.broadcast %85 : vector<8x8x1xf32> to vector<8x8x8xf32>
    %87 = arith.mulf %82, %86 : vector<8x8x8xf32>
    %88 = arith.truncf %87 : vector<8x8x8xf32> to vector<8x8x8xbf16>
    "tpu.trace_start"() <{level = 10 : i32, message = "bqk,bkd->bqd"}> : () -> ()
    %cst_33 = arith.constant dense<0.000000e+00> : vector<8x8x8xf32>
    %89 = tpu.matmul %88, %73, %cst_33 {dimension_numbers = #tpu.dot_dimension_numbers<[2], [1], [1], [2], [0, 0, 0, 1, 1, 2], [0], [0]>} : vector<8x8x8xbf16>, vector<8x8x8xbf16>, vector<8x8x8xf32> -> vector<8x8x8xf32>
    "tpu.trace_stop"() : () -> ()
    %90 = vector.extract_strided_slice %20 {offsets = [0, 0, 24], sizes = [8, 8, 8], strides = [1, 1, 1]} : vector<8x8x32xf32> to vector<8x8x8xf32>
    %91 = arith.truncf %90 : vector<8x8x8xf32> to vector<8x8x8xbf16>
    %92 = vector.extract_strided_slice %21 {offsets = [0, 0, 24], sizes = [8, 8, 8], strides = [1, 1, 1]} : vector<8x8x32xf32> to vector<8x8x8xf32>
    %93 = arith.truncf %92 : vector<8x8x8xf32> to vector<8x8x8xbf16>
    %94 = vector.extract_strided_slice %22 {offsets = [0, 0, 24], sizes = [8, 8, 8], strides = [1, 1, 1]} : vector<8x8x32xf32> to vector<8x8x8xf32>
    %95 = arith.truncf %94 : vector<8x8x8xf32> to vector<8x8x8xbf16>
    "tpu.trace_start"() <{level = 10 : i32, message = "bqd,bkd->bqk"}> : () -> ()
    %cst_34 = arith.constant dense<0.000000e+00> : vector<8x8x8xf32>
    %96 = tpu.matmul %91, %93, %cst_34 {dimension_numbers = #tpu.dot_dimension_numbers<[2], [2], [1], [1], [0, 0, 0, 1, 1, 1], [0], [0]>} : vector<8x8x8xbf16>, vector<8x8x8xbf16>, vector<8x8x8xf32> -> vector<8x8x8xf32>
    "tpu.trace_stop"() : () -> ()
    %97 = vector.shape_cast %23 : vector<8x8xf32> to vector<1x8x8xf32>
    %98 = vector.broadcast %97 : vector<1x8x8xf32> to vector<8x8x8xf32>
    %99 = arith.addf %96, %98 : vector<8x8x8xf32>
    %cst_35 = arith.constant dense<0xFF800000> : vector<8x8xf32>
    %100 = vector.multi_reduction <maximumf>, %99, %cst_35 [2] : vector<8x8x8xf32> to vector<8x8xf32>
    %101 = vector.shape_cast %100 : vector<8x8xf32> to vector<8x8x1xf32>
    %102 = vector.broadcast %101 : vector<8x8x1xf32> to vector<8x8x8xf32>
    %103 = arith.subf %99, %102 : vector<8x8x8xf32>
    %104 = math.exp %103 : vector<8x8x8xf32>
    %cst_36 = arith.constant dense<0.000000e+00> : vector<8x8xf32>
    %105 = vector.multi_reduction <add>, %104, %cst_36 [2] : vector<8x8x8xf32> to vector<8x8xf32>
    %106 = vector.shape_cast %105 : vector<8x8xf32> to vector<8x8x1xf32>
    %107 = tpu.reciprocal %106 {approx = true} : vector<8x8x1xf32> -> vector<8x8x1xf32>
    %108 = vector.broadcast %107 : vector<8x8x1xf32> to vector<8x8x8xf32>
    %109 = arith.mulf %104, %108 : vector<8x8x8xf32>
    %110 = arith.truncf %109 : vector<8x8x8xf32> to vector<8x8x8xbf16>
    "tpu.trace_start"() <{level = 10 : i32, message = "bqk,bkd->bqd"}> : () -> ()
    %cst_37 = arith.constant dense<0.000000e+00> : vector<8x8x8xf32>
    %111 = tpu.matmul %110, %95, %cst_37 {dimension_numbers = #tpu.dot_dimension_numbers<[2], [1], [1], [2], [0, 0, 0, 1, 1, 2], [0], [0]>} : vector<8x8x8xbf16>, vector<8x8x8xbf16>, vector<8x8x8xf32> -> vector<8x8x8xf32>
    "tpu.trace_stop"() : () -> ()
    %112 = tpu.concatenate %45, %67, %89, %111 in 2 : vector<8x8x8xf32>, vector<8x8x8xf32>, vector<8x8x8xf32>, vector<8x8x8xf32> -> vector<8x8x32xf32>
    %113 = vector.shape_cast %112 : vector<8x8x32xf32> to vector<64x32xf32>
    %114 = arith.truncf %113 : vector<64x32xf32> to vector<64x32xbf16>
    %c0_38 = arith.constant 0 : index
    %c0_39 = arith.constant 0 : index
    %115 = vector.load %arg11[%c0_38, %c0_39] : memref<32x32xbf16, #tpu.memory_space<vmem>>, vector<32x32xbf16>
    %cst_40 = arith.constant dense<0.000000e+00> : vector<64x32xf32>
    %116 = tpu.matmul %114, %115, %cst_40 {dimension_numbers = #tpu.dot_dimension_numbers<[1], [0], [0], [1], [0, 0, 1, 1], [], []>} : vector<64x32xbf16>, vector<32x32xbf16>, vector<64x32xf32> -> vector<64x32xf32>
    %117 = tpu.iota {dimensions = array<i32: 0>} : vector<64x1xi32>
    %c8_i32 = arith.constant 8 : i32
    %c0_i32 = arith.constant 0 : i32
    %118 = arith.cmpi eq, %c8_i32, %c0_i32 : i32
    %c1_i32 = arith.constant 1 : i32
    %119 = arith.select %118, %c1_i32, %c8_i32 : i32
    %120 = vector.broadcast %119 : i32 to vector<64x1xi32>
    %121 = arith.remsi %117, %120 : vector<64x1xi32>
    %c0_i32_41 = arith.constant 0 : i32
    %122 = vector.broadcast %c0_i32_41 : i32 to vector<64x1xi32>
    %123 = arith.cmpi ne, %121, %122 : vector<64x1xi32>
    %c0_i32_42 = arith.constant 0 : i32
    %124 = vector.broadcast %c0_i32_42 : i32 to vector<64x1xi32>
    %125 = arith.cmpi slt, %121, %124 : vector<64x1xi32>
    %c0_i32_43 = arith.constant 0 : i32
    %126 = arith.cmpi slt, %119, %c0_i32_43 : i32
    %127 = vector.broadcast %126 : i1 to vector<64x1xi1>
    %128 = vector.broadcast %127 : vector<64x1xi1> to vector<64x1xi1>
    %129 = arith.xori %125, %128 : vector<64x1xi1>
    %130 = arith.andi %129, %123 : vector<64x1xi1>
    %131 = vector.broadcast %119 : i32 to vector<64x1xi32>
    %132 = arith.addi %121, %131 : vector<64x1xi32>
    %133 = arith.select %130, %132, %121 : vector<64x1xi1>, vector<64x1xi32>
    %c0_i32_44 = arith.constant 0 : i32
    %134 = vector.broadcast %c0_i32_44 : i32 to vector<64x1xi32>
    %135 = arith.cmpi eq, %133, %134 : vector<64x1xi32>
    %cst_45 = arith.constant 0.000000e+00 : f32
    %136 = vector.shape_cast %135 : vector<64x1xi1> to vector<64x1xi1>
    %137 = vector.broadcast %136 : vector<64x1xi1> to vector<64x32xi1>
    %138 = vector.broadcast %cst_45 : f32 to vector<64x32xf32>
    %139 = arith.select %137, %138, %116 : vector<64x32xi1>, vector<64x32xf32>
    %c0_46 = arith.constant 0 : index
    %c0_47 = arith.constant 0 : index
    %140 = vector.load %arg12[%c0_46, %c0_47] : memref<1x32xf32, #tpu.memory_space<vmem>>, vector<1x32xf32>
    %141 = vector.broadcast %140 : vector<1x32xf32> to vector<64x32xf32>
    %142 = arith.addf %139, %141 : vector<64x32xf32>
    %c0_48 = arith.constant 0 : index
    %c0_49 = arith.constant 0 : index
    %143 = vector.load %arg13[%c0_48, %c0_49] : memref<64x32xf32, #tpu.memory_space<vmem>>, vector<64x32xf32>
    tpu.vector_store %arg13[%c0_48, %c0_49], %142 {strides = array<i32>} : memref<64x32xf32, #tpu.memory_space<vmem>>, vector<64x32xf32>,
    return
  }
  func.func @transform_0(%arg0: i32) -> (i32, i32) {
    %c0_i32 = arith.constant 0 : i32
    %c0_i32_0 = arith.constant 0 : i32
    return %arg0, %c0_i32 : i32, i32
  }
  func.func @transform_1(%arg0: i32) -> (i32, i32) {
    %c0_i32 = arith.constant 0 : i32
    %c0_i32_0 = arith.constant 0 : i32
    return %arg0, %c0_i32 : i32, i32
  }
  func.func @transform_2(%arg0: i32) -> (i32, i32) {
    %c0_i32 = arith.constant 0 : i32
    %c0_i32_0 = arith.constant 0 : i32
    return %arg0, %c0_i32 : i32, i32
  }
  func.func @transform_3(%arg0: i32) -> (i32, i32) {
    %c0_i32 = arith.constant 0 : i32
    %c0_i32_0 = arith.constant 0 : i32
    %c0_i32_1 = arith.constant 0 : i32
    return %c0_i32, %c0_i32_0 : i32, i32
  }
  func.func @transform_4(%arg0: i32) -> (i32, i32) {
    %c0_i32 = arith.constant 0 : i32
    %c0_i32_0 = arith.constant 0 : i32
    %c0_i32_1 = arith.constant 0 : i32
    return %c0_i32, %c0_i32_0 : i32, i32
  }
  func.func @transform_5(%arg0: i32) -> (i32, i32) {
    %c0_i32 = arith.constant 0 : i32
    %c0_i32_0 = arith.constant 0 : i32
    %c0_i32_1 = arith.constant 0 : i32
    return %c0_i32, %c0_i32_0 : i32, i32
  }
  func.func @transform_6(%arg0: i32) -> (i32, i32) {
    %c0_i32 = arith.constant 0 : i32
    %c0_i32_0 = arith.constant 0 : i32
    %c0_i32_1 = arith.constant 0 : i32
    return %c0_i32, %c0_i32_0 : i32, i32
  }
  func.func @transform_7(%arg0: i32) -> (i32, i32) {
    %c0_i32 = arith.constant 0 : i32
    %c0_i32_0 = arith.constant 0 : i32
    %c0_i32_1 = arith.constant 0 : i32
    return %c0_i32, %c0_i32_0 : i32, i32
  }
  func.func @transform_8(%arg0: i32) -> (i32, i32) {
    %c0_i32 = arith.constant 0 : i32
    %c0_i32_0 = arith.constant 0 : i32
    %c0_i32_1 = arith.constant 0 : i32
    return %c0_i32, %c0_i32_0 : i32, i32
  }
  func.func @transform_9(%arg0: i32) -> (i32, i32) {
    %c0_i32 = arith.constant 0 : i32
    %c0_i32_0 = arith.constant 0 : i32
    %c0_i32_1 = arith.constant 0 : i32
    return %c0_i32, %c0_i32_0 : i32, i32
  }
  func.func @transform_10(%arg0: i32) -> (i32, i32) {
    %c0_i32 = arith.constant 0 : i32
    %c0_i32_0 = arith.constant 0 : i32
    %c0_i32_1 = arith.constant 0 : i32
    return %c0_i32, %c0_i32_0 : i32, i32
  }
  func.func @transform_11(%arg0: i32) -> (i32, i32) {
    %c0_i32 = arith.constant 0 : i32
    %c0_i32_0 = arith.constant 0 : i32
    %c0_i32_1 = arith.constant 0 : i32
    return %c0_i32, %c0_i32_0 : i32, i32
  }
  func.func @transform_12(%arg0: i32) -> (i32, i32) {
    %c0_i32 = arith.constant 0 : i32
    %c0_i32_0 = arith.constant 0 : i32
    return %arg0, %c0_i32 : i32, i32
  }
}

</mosaic_0001>

<bundles_post_ra>
// kernel: tpu_custom_call.1
= control target key start
LH: loop header
LB: loop body
LE: loop exit
PB: predicated region body
PF: predicated region fallthrough
CT: control target
= control target key end

     0   :  { %s5850_s21 = smov 0   ;;  %s6949_s0 = inlined_call_operand.vmem [shape: bf16[256,32], index: 0, kind: input, shape index: {}]   ;;  %s6950_s1 = inlined_call_operand.vmem [shape: bf16[256,32], index: 1, kind: input, shape index: {}]   ;;  %s6951_s2 = inlined_call_operand.vmem [shape: bf16[256,32], index: 2, kind: input, shape index: {}]   ;;  %s6952_s3 = inlined_call_operand.vmem [shape: f32[8,8], index: 3, kind: input, shape index: {}]   ;;  %s6953_s4 = inlined_call_operand.vmem [shape: bf16[32,32], index: 4, kind: input, shape index: {}]   ;;  %s6954_s5 = inlined_call_operand.vmem [shape: f32[1,32], index: 5, kind: input, shape index: {}]   ;;  %s6955_s6 = inlined_call_operand.vmem [shape: bf16[32,32], index: 6, kind: input, shape index: {}]   ;;  %s6956_s7 = inlined_call_operand.vmem [shape: f32[1,32], index: 7, kind: input, shape index: {}]   ;;  %s6957_s8 = inlined_call_operand.vmem [shape: bf16[32,32], index: 8, kind: input, shape index: {}]   ;;  %s6958_s9 = inlined_call_operand.vmem [shape: f32[1,32], index: 9, kind: input, shape index: {}]   ;;  %s6959_s10 = inlined_call_operand.vmem [shape: bf16[32,32], index: 10, kind: input, shape index: {}]   ;;  %s6960_s11 = inlined_call_operand.vmem [shape: f32[1,32], index: 11, kind: input, shape index: {}]   ;;  %s6961_s12 = inlined_call_operand.vmem [shape: f32[256,32], index: 12, kind: output, shape index: {}]  }
   0x1 LB: > { %s4837_s22 = sadd.s32 4294967295, %s5775_s21   ;;  %p4841_p0 = scmp.ge.s32.totalorder %s5775_s21, 1  ;;  %s5775_s21 = sphi %s5850_s21, %s22_s21  }
   0x2   : > { %p385_p1 = scmp.lt.s32.totalorder %s5775_s21, 5 }
   0x4   : > { %p386_p2 = pnand %p4841_p0, %p385_p1 }
   0x5   : > { %v5620_v0 = vld [vmem:[%s6953_s4] sm:$0xff] (!%p386_p2)   ;;  %s4842_s25 = sshll.u32 (!%p386_p2), %s4837_s22, 3  ;;  %v5621_v1 = vld [vmem:[%s6953_s4 + $0x8] sm:$0xff] (!%p386_p2)   ;;  %vm513_vm0 = vcmask (!%p386_p2), 261120   ;;  %v5777_v18 = vmov (!%p386_p2), 0.0   ;;  %vm5778_vm1 = vmmov (!%p386_p2), 0  }
   0x6   : > { %389 = sbr.rel (%p386_p2) target bundleno = 3372 (0xd2c), region = 68  ;;  %p438_p3 = scmp.lt.s32.totalorder (!%p386_p2), %s4842_s25, 31  ;;  %5540 = vmatprep.subr.bf16.mxu1 (!%p386_p2), %v5620_v0  ;;  %5108 = vmatprep.subr.bf16.mxu0 (!%p386_p2), %v5620_v0  ;;  %v5624_v2 = vld [vmem:[%s6955_s6] sm:$0xff] (!%p386_p2)   ;;  %v5625_v4 = vld [vmem:[%s6955_s6 + $0x8] sm:$0xff] (!%p386_p2)   ;;  %vm880_vm2 = vcmask (!%p386_p2), 64512   ;;  %vm1348_vm3 = vcmask (!%p386_p2), 1043456  }
   0x7   : > { %5542 = vmatpush3.bf16.msra.mxu1 (!%p386_p2), %v5620_v0  ;;  %5109 = vmatpush3.bf16.msra.mxu0 (!%p386_p2), %v5620_v0  ;;  %v5632_v3 = vld [vmem:[%s6957_s8] sm:$0xff] (!%p386_p2)   ;;  %v5633_v13 = vld [vmem:[%s6957_s8 + $0x8] sm:$0xff] (!%p386_p2)   ;;  %s5780_s22 = smov (!%p386_p2), 112   ;;  %s5781_s26 = smov (!%p386_p2), 104   ;;  %vm4482_vm4 = vcmask (!%p386_p2), 130048   ;;  %vm4491_vm5 = vcmask (!%p386_p2), 195584  }
   0x8   : > { %5541 = vmatprep.subr.bf16.mxu1 (!%p386_p2), %v5621_v1  ;;  %5110 = vmatprep.subr.bf16.mxu0 (!%p386_p2), %v5621_v1  ;;  %v5913_v25 = vld [vmem:[%s6956_s7] ss:$0 sm:$0xff] (!%p386_p2)  ;;  %s5783_s28 = smov (!%p386_p2), 16   ;;  %s5784_s13 = smov (!%p386_p2), 24  }
   0x9   : > { %v5918_v28 = vld [vmem:[%s6954_s5] ss:$0 sm:$0xff] (!%p386_p2) }
   0xb   : > { %5543 = vmatpush3.bf16.msra.mxu1 (!%p386_p2), %v5621_v1  ;;  %5111 = vmatpush3.bf16.msra.mxu0 (!%p386_p2), %v5621_v1 }
   0xc   : > { %5120 = vmatprep.subr.bf16.mxu1 (!%p386_p2), %v5624_v2  ;;  %5132 = vmatprep.subr.bf16.mxu0 (!%p386_p2), %v5632_v3 }
   0xd   : > { %s6967_s25 = smov (!%p438_p3, %s4842_s25), 31 }
   0xe   : > { %s4843_s14 = sshll.u32 %s6967_s25, 2  ;;  %s4849_s16 = sshll.u32 %s6967_s25, 3 }
   0xf   : > { %s441_s17 = scalar_lea.vmem %s6949_s0, %s4843_s14  ;;  %s447_s20 = scalar_lea.vmem %s6950_s1, %s4843_s14 }
  0x10   : > { %v5622_v5 = vld [vmem:[%s441_s17 + $0x10] sm:$0xff]   ;;  %v5623_v6 = vld [vmem:[%s441_s17 + $0x18] sm:$0xff]   ;;  %v5626_v7 = vld [vmem:[%s447_s20] sm:$0xff]   ;;  %s453_s27 = scalar_lea.vmem %s6951_s2, %s4843_s14 }
  0x11   : > { %5116 = vmatprep.mubr.msk.bf16.mxu1 %vm513_vm0, %v5622_v5  ;;  %v5628_v8 = vld [vmem:[%s441_s17] sm:$0xff]   ;;  %v5629_v9 = vld [vmem:[%s441_s17 + $0x8] sm:$0xff]   ;;  %v5630_v11 = vld [vmem:[%s447_s20 + $0x10] sm:$0xff]  }
  0x12   : > { %5117 = vmatmul.mubr.msk.bf16.vlgmr.msra.gmra.mrb[0].mxu1 %vm513_vm0, %v5623_v6  ;;  %v5627_v10 = vld [vmem:[%s447_s20 + $0x8] sm:$0xff]   ;;  %5112 = vmatprep.mubr.msk.bf16.mxu0 %vm513_vm0, %v5628_v8  ;;  %v5631_v12 = vld [vmem:[%s447_s20 + $0x18] sm:$0xff]   ;;  %v5634_v14 = vld [vmem:[%s453_s27] sm:$0xff]   ;;  %s5779_s20 = smov 120  }
  0x13   : > { %5121 = vmatpush3.bf16.msra.mxu1 %v5624_v2  ;;  %5124 = vmatprep.mubr.msk.bf16.mxu1 %vm513_vm0, %v5626_v7  ;;  %v5635_v15 = vld [vmem:[%s453_s27 + $0x8] sm:$0xff]   ;;  %v5636_v16 = vld [vmem:[%s453_s27 + $0x10] sm:$0xff]   ;;  %v5637_v17 = vld [vmem:[%s453_s27 + $0x18] sm:$0xff]   ;;  %s5782_s27 = smov 8  }
  0x14   : > { %5122 = vmatprep.subr.bf16.mxu1 %v5625_v4  ;;  %5113 = vmatmul.mubr.msk.bf16.vlgmr.msra.gmra.mrb[0].mxu0 %vm513_vm0, %v5629_v9 }
  0x15   : > { %5133 = vmatpush3.bf16.msra.mxu0 %v5632_v3  ;;  %5136 = vmatprep.mubr.msk.bf16.mxu0 %vm513_vm0, %v5634_v14 }
  0x16   : > { %5134 = vmatprep.subr.bf16.mxu0 %v5633_v13 }
  0x17   : > { %5123 = vmatpush3.bf16.msra.mxu1 %v5625_v4 }
  0x18   : > { %5144 = vmatprep.subr.bf16.mxu1 %v5777_v18 }
  0x19   : > { %5135 = vmatpush3.bf16.msra.mxu0 %v5633_v13 }
  0x1a   : > { %5125 = vmatmul.mubr.msk.bf16.vlgmr.msra.gmra.mrb[4].mxu1 %vm513_vm0, %v5627_v10  ;;  %5156 = vmatprep.subr.bf16.mxu0 %v5777_v18 }
  0x1b   : > { %5128 = vmatprep.mubr.msk.bf16.mxu1 %vm513_vm0, %v5630_v11 }
  0x1c   : > { %5137 = vmatmul.mubr.msk.bf16.vlgmr.msra.gmra.mrb[4].mxu0 %vm513_vm0, %v5635_v15 }
  0x1d   : > { %5140 = vmatprep.mubr.msk.bf16.mxu0 %vm513_vm0, %v5636_v16 }
  0x22   : > { %5129 = vmatmul.mubr.msk.bf16.gmra.mrb[8].mxu1 %vm513_vm0, %v5631_v12 }
  0x23   : > { %5146 = vmatprep.mubr.msk.bf16.mxu1 %vm5778_vm1, %v5777_v18 }
  0x24   : > { %5141 = vmatmul.mubr.msk.bf16.gmra.mrb[8].mxu0 %vm513_vm0, %v5637_v17 }
  0x25   : > { %5158 = vmatprep.mubr.msk.bf16.mxu0 %vm5778_vm1, %v5777_v18 }
  0xe5   : > { %v5118_v19 = vpop.f32.mrb[0].mxu1 }
  0xe6   : > { %v576_v20 = vpop.f32.mrb[1].mxu1  ;;  %v585_v63 = vadd.f32 %v5118_v19, %v5918_v28 }
  0xe7   : > { %v5906_v21 = vpop.f32.mrb[2].mxu1  ;;  %v5114_v23 = vpop.f32.mrb[0].mxu0  ;;  %v577_v51 = vadd.f32 %v5918_v28, %v576_v20 }
  0xe8   : > { %v5908_v22 = vpop.f32.mrb[3].mxu1  ;;  %v560_v24 = vpop.f32.mrb[1].mxu0  ;;  %v569_v32 = vadd.f32 %v5114_v23, %v5918_v28  ;;  %v853_v6 = vmul.f32 0.35355338, %v585_v63  ;;  %v588_v16 = vadd.f32 %v5906_v21, %v5918_v28  ;;  %v4872_v21 = vld [vmem:[%s6958_s9] ss:$0 sm:$0xff] }
  0xe9   : > { %v5115_v26 = vpop.f32.mrb[2].mxu0  ;;  %v561_v35 = vadd.f32 %v5918_v28, %v560_v24  ;;  %v851_v59 = vmul.f32 0.35355338, %v577_v51  ;;  %v580_v9 = vadd.f32 %v5918_v28, %v5908_v22 }
  0xea   : > { %v563_v27 = vpop.f32.mrb[3].mxu0  ;;  %v849_v39 = vmul.f32 0.35355338, %v569_v32  ;;  %v572_v1 = vadd.f32 %v5115_v26, %v5918_v28  ;;  %v5991_v10 = vpack.c.bf16 %v853_v6, %v853_v6  ;;  %v854_v20 = vmul.f32 0.35355338, %v588_v16 }
  0xeb   : > { %v847_v42 = vmul.f32 0.35355338, %v561_v35  ;;  %v564_v55 = vadd.f32 %v5918_v28, %v563_v27  ;;  %v5967_v0 = vpack.c.bf16 %v851_v59, %v851_v59  ;;  %v852_v14 = vmul.f32 0.35355338, %v580_v9 }
  0xec   : > { %v5935_v45 = vpack.c.bf16 %v849_v39, %v849_v39  ;;  %v850_v7 = vmul.f32 0.35355338, %v572_v1  ;;  %v6020_v22 = vpack.c.bf16 %v854_v20, %v854_v20 }
  0xed   : > { %v5126_v29 = vpop.f32.mrb[4].mxu1  ;;  %v5939_v48 = vpack.c.bf16 %v847_v42, %v847_v42  ;;  %v848_v61 = vmul.f32 0.35355338, %v564_v55  ;;  %v6011_v17 = vpack.c.bf16 %v852_v14, %v852_v14 }
  0xee   : > { %v697_v30 = vadd.f32 %v5126_v29, %v5913_v25  ;;  %v688_v31 = vpop.f32.mrb[5].mxu1  ;;  %v5993_v11 = vpack.c.bf16 %v850_v7, %v850_v7 }
  0xef   : > { %v689_v33 = vadd.f32 %v5913_v25, %v688_v31  ;;  %v5127_v34 = vpop.f32.mrb[6].mxu1  ;;  %v5970_v2 = vpack.c.bf16 %v848_v61, %v848_v61  ;;  %v5138_v23 = vpop.f32.mrb[4].mxu0 }
  0xf0   : > { %v5924_v36 = vpack.c.bf16 %v697_v30, %v697_v30  ;;  %v691_v37 = vpop.f32.mrb[7].mxu1  ;;  %v700_v56 = vadd.f32 %v5127_v34, %v5913_v25  ;;  %v6029_v24 = vadd.f32 %v5138_v23, %v4872_v21 }
  0xf1   : > { %v5926_v38 = vpack.c.bf16 %v689_v33, %v689_v33  ;;  %v692_v41 = vadd.f32 %v5913_v25, %v691_v37 }
  0xf2   : > { %v977_v40 = vsel %vm880_vm2, %v5924_v36, 0  ;;  %v5964_v62 = vpack.c.bf16 %v700_v56, %v700_v56 }
  0xf3   : > { %5157 = vmatpush3.bf16.xpose.msra.mxu0 %v977_v40  ;;  %v885_v43 = vsel %vm880_vm2, %v5926_v38, 0  ;;  %v5937_v47 = vpack.c.bf16 %v692_v41, %v692_v41 }
  0xf4   : > { %5145 = vmatpush3.bf16.xpose.msra.mxu1 %v885_v43  ;;  %5168 = vmatprep.subr.bf16.mxu0 %v5777_v18  ;;  %v1023_v5 = vsel %vm880_vm2, %v5964_v62, 0 }
  0xf5   : > { %v5130_v44 = vpop.f32.mrb[8].mxu1  ;;  %5150 = vmatprep.subr.bf16.mxu1 %v5777_v18  ;;  %v931_v57 = vsel %vm880_vm2, %v5937_v47, 0 }
  0xf6   : > { %v704_v46 = vpop.f32.mrb[9].mxu1  ;;  %v713_v53 = vadd.f32 %v5130_v44, %v5913_v25 }
  0xf7   : > { %v705_v49 = vadd.f32 %v5913_v25, %v704_v46  ;;  %v5131_v50 = vpop.f32.mrb[10].mxu1  ;;  %v6054_v46 = vld [vmem:[%s6952_s3] sm:$0xff] }
  0xf8   : > { %v707_v52 = vpop.f32.mrb[11].mxu1  ;;  %v5958_v60 = vpack.c.bf16 %v713_v53, %v713_v53  ;;  %v716_v12 = vadd.f32 %v5131_v50, %v5913_v25 }
  0xf9   : > { %v5944_v54 = vpack.c.bf16 %v705_v49, %v705_v49  ;;  %v708_v4 = vadd.f32 %v5913_v25, %v707_v52  ;;  %v816_v25 = vpop.f32.mrb[5].mxu0 }
  0xfa   : > { %5159 = vmatmul.mubr.msk.bf16.vlgmr.msra.gmra.mrb[12].mxu0 %vm880_vm2, %v5935_v45  ;;  %v1161_v3 = vsel %vm880_vm2, %v5958_v60, 0  ;;  %v6004_v15 = vpack.c.bf16 %v716_v12, %v716_v12  ;;  %v5139_v26 = vpop.f32.mrb[6].mxu0  ;;  %v817_v32 = vadd.f32 %v4872_v21, %v816_v25 }
  0xfb   : > { %5147 = vmatmul.mubr.msk.bf16.vlgmr.msra.gmra.mrb[12].mxu1 %vm880_vm2, %v5939_v48  ;;  %v1069_v58 = vsel %vm880_vm2, %v5944_v54, 0  ;;  %5170 = vmatprep.mubr.msk.bf16.mxu0 %vm5778_vm1, %v5777_v18  ;;  %v5981_v8 = vpack.c.bf16 %v708_v4, %v708_v4  ;;  %v6031_v27 = vadd.f32 %v5139_v26, %v4872_v21  ;;  %v819_v28 = vpop.f32.mrb[7].mxu0 }
  0xfc   : > { %5151 = vmatpush3.bf16.xpose.msra.mxu1 %v931_v57  ;;  %5169 = vmatpush3.bf16.xpose.msra.mxu0 %v1069_v58  ;;  %v1207_v19 = vsel %vm880_vm2, %v6004_v15, 0  ;;  %v5142_v29 = vpop.f32.mrb[8].mxu0  ;;  %v820_v33 = vadd.f32 %v4872_v21, %v819_v28  ;;  %v6041_v41 = vpack.c.bf16 %v817_v32, %v817_v32 }
  0xfd   : > { %5152 = vmatprep.mubr.msk.bf16.mxu1 %vm5778_vm1, %v5777_v18  ;;  %5162 = vmatprep.subr.bf16.mxu1 %v5777_v18  ;;  %v1115_v13 = vsel %vm880_vm2, %v5981_v8, 0  ;;  %v6033_v30 = vadd.f32 %v5142_v29, %v4872_v21  ;;  %v832_v31 = vpop.f32.mrb[9].mxu0 }
  0xfe   : > { %5180 = vmatprep.subr.bf16.mxu0 %v5777_v18  ;;  %v6035_v34 = vadd.f32 %v4872_v21, %v832_v31  ;;  %v5143_v35 = vpop.f32.mrb[10].mxu0  ;;  %v6043_v42 = vpack.c.bf16 %v820_v33, %v820_v33  ;;  %v1350_v43 = vsel %vm1348_vm3, %v6041_v41, 0 }
  0xff   : > { %v6037_v37 = vadd.f32 %v5143_v35, %v4872_v21  ;;  %v835_v39 = vpop.f32.mrb[11].mxu0 }
 0x100   : > { %v6039_v40 = vadd.f32 %v4872_v21, %v835_v39  ;;  %v1396_v44 = vsel %vm1348_vm3, %v6043_v42, 0 }
 0x103   : > { %5153 = vmatmul.mubr.msk.bf16.vlgmr.msra.gmra.mrb[16].mxu1 %vm880_vm2, %v5970_v2  ;;  %5171 = vmatmul.mubr.msk.bf16.vlgmr.msra.gmra.mrb[16].mxu0 %vm880_vm2, %v5967_v0 }
 0x104   : > { %5163 = vmatpush3.bf16.xpose.msra.mxu1 %v1023_v5  ;;  %5181 = vmatpush3.bf16.xpose.msra.mxu0 %v1161_v3 }
 0x105   : > { %5164 = vmatprep.mubr.msk.bf16.mxu1 %vm5778_vm1, %v5777_v18  ;;  %5182 = vmatprep.mubr.msk.bf16.mxu0 %vm5778_vm1, %v5777_v18 }
 0x106   : > { %5174 = vmatprep.subr.bf16.mxu1 %v5777_v18  ;;  %5192 = vmatprep.subr.bf16.mxu0 %v5777_v18 }
 0x10b   : > { %5165 = vmatmul.mubr.msk.bf16.vlgmr.msra.gmra.mrb[20].mxu1 %vm880_vm2, %v5993_v11  ;;  %5183 = vmatmul.mubr.msk.bf16.vlgmr.msra.gmra.mrb[20].mxu0 %vm880_vm2, %v5991_v10 }
 0x10c   : > { %5175 = vmatpush3.bf16.xpose.msra.mxu1 %v1115_v13  ;;  %5176 = vmatprep.mubr.msk.bf16.mxu1 %vm5778_vm1, %v5777_v18 }
 0x10d   : > { %5186 = vmatprep.subr.bf16.mxu1 %v5777_v18  ;;  %5194 = vmatprep.mubr.msk.bf16.mxu0 %vm5778_vm1, %v5777_v18 }
 0x10e   : > { %5193 = vmatpush3.bf16.msra.mxu0 %v1350_v43 }
 0x10f   : > { %5204 = vmatprep.subr.bf16.mxu0 %v5777_v18 }
 0x113   : > { %5177 = vmatmul.mubr.msk.bf16.vlgmr.msra.gmra.mrb[24].mxu1 %vm880_vm2, %v6011_v17 }
 0x114   : > { %5187 = vmatpush3.bf16.xpose.msra.mxu1 %v1207_v19  ;;  %5188 = vmatprep.mubr.msk.bf16.mxu1 %vm5778_vm1, %v5777_v18 }
 0x115   : > { %5198 = vmatprep.subr.bf16.mxu1 %v5777_v18 }
 0x11b   : > { %5189 = vmatmul.mubr.msk.bf16.vlgmr.msra.gmra.mrb[28].mxu1 %vm880_vm2, %v6020_v22 }
 0x11c   : > { %5200 = vmatprep.mubr.msk.bf16.mxu1 %vm5778_vm1, %v5777_v18  ;;  %5199 = vmatpush3.bf16.msra.mxu1 %v1396_v44 }
 0x11d   : > { %5210 = vmatprep.subr.bf16.mxu1 %v5777_v18 }
 0x1cd   : > { %v1013_v49 = vpop.f32.mrb[12].mxu0 }
 0x1ce   : > { %v1014_v50 = vadd.f32 %v1013_v49, %v6054_v46  ;;  %v921_v51 = vpop.f32.mrb[12].mxu1  ;;  %v5160_v52 = vpop.f32.mrb[13].mxu0 }
 0x1cf   : > { %v922_v53 = vadd.f32 %v921_v51, %v6054_v46  ;;  %v5148_v55 = vpop.f32.mrb[13].mxu1  ;;  %v1016_v56 = vpop.f32.mrb[14].mxu0 }
 0x1d0   : > { %v1255_v57 = vsel %vm880_vm2, %v1014_v50, -inf  ;;  %v924_v58 = vpop.f32.mrb[14].mxu1  ;;  %v5161_v59 = vpop.f32.mrb[15].mxu0 }
 0x1d1   : > { %1256 = vmax.xlane.f32.xlu1 %v1255_v57  ;;  %v1249_v61 = vsel %vm880_vm2, %v922_v53, -inf  ;;  %v5149_v63 = vpop.f32.mrb[15].mxu1 }
 0x1d2   : > { %1250 = vmax.xlane.f32.xlu0 %v1249_v61 }
 0x1d6   : > { %v967_v1 = vpop.f32.mrb[16].mxu1  ;;  %v1105_v3 = vpop.f32.mrb[16].mxu0 }
 0x1d7   : > { %v968_v4 = vadd.f32 %v967_v1, %v6054_v46  ;;  %v5154_v5 = vpop.f32.mrb[17].mxu1  ;;  %v5172_v6 = vpop.f32.mrb[17].mxu0  ;;  %v1106_v12 = vadd.f32 %v1105_v3, %v6054_v46 }
 0x1d8   : > { %v970_v7 = vpop.f32.mrb[18].mxu1  ;;  %v1108_v9 = vpop.f32.mrb[18].mxu0 }
 0x1d9   : > { %v5155_v13 = vpop.f32.mrb[19].mxu1  ;;  %v5173_v14 = vpop.f32.mrb[19].mxu0  ;;  %v1252_v16 = vsel %vm880_vm2, %v968_v4, -inf  ;;  %v1261_v19 = vsel %vm880_vm2, %v1106_v12, -inf }
 0x1da   : > { %1253 = vmax.xlane.f32.xlu0 %v1252_v16 }
 0x1de   : > { %v1197_v20 = vpop.f32.mrb[20].mxu0  ;;  %1262 = vmax.xlane.f32.xlu0 %v1261_v19  ;;  %v1059_v21 = vpop.f32.mrb[20].mxu1 }
 0x1df   : > { %v1198_v23 = vadd.f32 %v1197_v20, %v6054_v46  ;;  %v1060_v25 = vadd.f32 %v1059_v21, %v6054_v46  ;;  %v5166_v26 = vpop.f32.mrb[21].mxu1  ;;  %v5184_v28 = vpop.f32.mrb[21].mxu0 }
 0x1e0   : > { %v1062_v29 = vpop.f32.mrb[22].mxu1  ;;  %v1200_v31 = vpop.f32.mrb[22].mxu0 }
 0x1e1   : > { %v5167_v32 = vpop.f32.mrb[23].mxu1  ;;  %v5185_v33 = vpop.f32.mrb[23].mxu0  ;;  %v1267_v35 = vsel %vm880_vm2, %v1198_v23, -inf  ;;  %v1258_v39 = vsel %vm880_vm2, %v1060_v25, -inf }
 0x1e2   : > { %1268 = vmax.xlane.f32.xlu0 %v1267_v35  ;;  %1259 = vmax.xlane.f32.xlu1 %v1258_v39 }
 0x1e6   : > { %v1151_v43 = vpop.f32.mrb[24].mxu1 }
 0x1e7   : > { %v6069_v44 = vadd.f32 %v1151_v43, %v6054_v46  ;;  %v5178_v49 = vpop.f32.mrb[25].mxu1 }
 0x1e8   : > { %v1154_v51 = vpop.f32.mrb[26].mxu1 }
 0x1e9   : > { %v5179_v52 = vpop.f32.mrb[27].mxu1  ;;  %v1264_v55 = vsel %vm880_vm2, %v6069_v44, -inf }
 0x1ea   : > { %1265 = vmax.xlane.f32.xlu1 %v1264_v55 }
 0x1ee   : > { %v1243_v56 = vpop.f32.mrb[28].mxu1 }
 0x1ef   : > { %v6074_v57 = vadd.f32 %v1243_v56, %v6054_v46  ;;  %v5190_v58 = vpop.f32.mrb[29].mxu1 }
 0x1f0   : > { %v1246_v59 = vpop.f32.mrb[30].mxu1 }
 0x1f1   : > { %v5191_v61 = vpop.f32.mrb[31].mxu1  ;;  %v1270_v63 = vsel %vm880_vm2, %v6074_v57, -inf }
 0x1f2   : > { %1271 = vmax.xlane.f32.xlu1 %v1270_v63 }
 0x25e   : > { %v1257_v1 = vpop.xlane.xlu1 %1256 }
 0x25f   : > { %v1275_v3 = vsub.f32 %v1014_v50, %v1257_v1  ;;  %v1251_v5 = vpop.xlane.xlu0 %1250 }
 0x260   : > { %v1273_v6 = vsub.f32 %v922_v53, %v1251_v5 }
 0x261   : > { %v1285_v7 = vmul.f32 1.442695, %v1275_v3 }
 0x262   : > { %v1281_v9 = vmul.f32 1.442695, %v1273_v6 }
 0x264   : > { %5640 = vpow2.f32 %v1281_v9 }
 0x265   : > { %5642 = vpow2.f32 %v1285_v7 }
 0x267   : > { %v1254_v13 = vpop.xlane.xlu0 %1253 }
 0x268   : > { %v1274_v14 = vsub.f32 %v968_v4, %v1254_v13  ;;  %v6142_v13 = vpack.c.bf16 %v6029_v24, %v6029_v24 }
 0x26a   : > { %v1283_v16 = vmul.f32 1.442695, %v1274_v14 }
 0x26b   : > { %v1263_v19 = vpop.xlane.xlu0 %1262 }
 0x26c   : > { %5644 = vpow2.f32 %v1283_v16  ;;  %v1277_v20 = vsub.f32 %v1106_v12, %v1263_v19 }
 0x26e   : > { %v6078_v21 = vpop.eup %5640  ;;  %v1289_v26 = vmul.f32 1.442695, %v1277_v20 }
 0x26f   : > { %v1269_v28 = vpop.xlane.xlu0 %1268  ;;  %v1260_v29 = vpop.xlane.xlu1 %1259  ;;  %v1297_v50 = vsel %vm880_vm2, %v6078_v21, 0.0 }
 0x270   : > { %v6082_v31 = vpop.eup %5642  ;;  %5646 = vpow2.f32 %v1289_v26  ;;  %v1279_v53 = vsub.f32 %v1198_v23, %v1269_v28  ;;  %v1276_v32 = vsub.f32 %v1060_v25, %v1260_v29  ;;  %1298 = vadd.xlane.f32.xlu0 %v1297_v50  ;;  %v1442_v26 = vsel %vm1348_vm3, %v6142_v13, 0 }
 0x271   : > { %v1303_v35 = vsel %vm880_vm2, %v6082_v31, 0.0  ;;  %v6158_v50 = vpack.c.bf16 %v6031_v27, %v6031_v27 }
 0x272   : > { %v1293_v33 = vmul.f32 1.442695, %v1279_v53  ;;  %v1287_v4 = vmul.f32 1.442695, %v1276_v32  ;;  %v6162_v53 = vpack.c.bf16 %v6035_v34, %v6035_v34 }
 0x273   : > { %v1488_v27 = vsel %vm1348_vm3, %v6158_v50, 0 }
 0x274   : > { %5648 = vpow2.f32 %v1293_v33  ;;  %1304 = vadd.xlane.f32.xlu0 %v1303_v35 }
 0x275   : > { %5650 = vpow2.f32 %v1287_v4 }
 0x276   : > { %v6086_v12 = vpop.eup %5644 }
 0x277   : > { %v1300_v39 = vsel %vm880_vm2, %v6086_v12, 0.0  ;;  %v1266_v55 = vpop.xlane.xlu1 %1265 }
 0x278   : > { %1301 = vadd.xlane.f32.xlu1 %v1300_v39  ;;  %v1278_v56 = vsub.f32 %v6069_v44, %v1266_v55  ;;  %v6183_v39 = vpack.c.bf16 %v6033_v30, %v6033_v30 }
 0x27a   : > { %v6090_v43 = vpop.eup %5646  ;;  %v1291_v58 = vmul.f32 1.442695, %v1278_v56  ;;  %v1626_v30 = vsel %vm1348_vm3, %v6183_v39, 0 }
 0x27b   : > { %v1309_v23 = vsel %vm880_vm2, %v6090_v43, 0.0 }
 0x27c   : > { %1310 = vadd.xlane.f32.xlu0 %v1309_v23  ;;  %5652 = vpow2.f32 %v1291_v58  ;;  %v6188_v23 = vpack.c.bf16 %v6039_v40, %v6039_v40 }
 0x27e   : > { %v6094_v25 = vpop.eup %5648  ;;  %v1580_v40 = vsel %vm1348_vm3, %v6188_v23, 0 }
 0x27f   : > { %v6096_v49 = vpop.eup %5650  ;;  %v1315_v51 = vsel %vm880_vm2, %v6094_v25, 0.0  ;;  %v1272_v61 = vpop.xlane.xlu1 %1271 }
 0x280   : > { %1316 = vadd.xlane.f32.xlu0 %v1315_v51  ;;  %v1306_v52 = vsel %vm880_vm2, %v6096_v49, 0.0  ;;  %v1280_v63 = vsub.f32 %v6074_v57, %v1272_v61 }
 0x281   : > { %1307 = vadd.xlane.f32.xlu1 %v1306_v52 }
 0x282   : > { %v1295_v1 = vmul.f32 1.442695, %v1280_v63 }
 0x284   : > { %5654 = vpow2.f32 %v1295_v1 }
 0x286   : > { %v6119_v59 = vpop.eup %5652 }
 0x287   : > { %v1312_v44 = vsel %vm880_vm2, %v6119_v59, 0.0 }
 0x28e   : > { %v6128_v3 = vpop.eup %5654 }
 0x28f   : > { %v1318_v5 = vsel %vm880_vm2, %v6128_v3, 0.0 }
 0x292   : > { %1770 = vrot.lane.b32.xlu1 %v5937_v47, %s5779_s20 }
 0x296   : > { %1718 = vrot.lane.b32.xlu0 %v5926_v38, %s5779_s20 }
 0x29a   : > { %1822 = vrot.lane.b32.xlu0 %v5924_v36, %s5779_s20 }
 0x29e   : > { %1819 = vrot.lane.b32.xlu0 %v5935_v45, %s5779_s20 }
 0x2a2   : > { %1926 = vrot.lane.b32.xlu0 %v5944_v54, %s5779_s20 }
 0x2a6   : > { %1923 = vrot.lane.b32.xlu0 %v5967_v0, %s5779_s20 }
 0x2aa   : > { %2030 = vrot.lane.b32.xlu0 %v5958_v60, %s5779_s20 }
 0x2ae   : > { %2027 = vrot.lane.b32.xlu0 %v5991_v10, %s5779_s20 }
 0x2b2   : > { %2227 = vrot.lane.b32.xlu0 %v6041_v41, %s5779_s20 }
 0x2b6   : > { %1313 = vadd.xlane.f32.xlu1 %v1312_v44 }
 0x2c7   : > { %1715 = vrot.lane.b32.xlu1 %v5939_v48, %s5779_s20 }
 0x2eb   : > { %1319 = vadd.xlane.f32.xlu1 %v1318_v5 }
 0x2fc   : > { %1767 = vrot.lane.b32.xlu1 %v5970_v2, %s5779_s20 }
 0x2fd   : > { %v1299_v6 = vpop.xlane.xlu0 %1298 }
 0x2fe   : > { %5656 = vrcp.f32 %v1299_v6 }
 0x300   : > { %1874 = vrot.lane.b32.xlu1 %v5964_v62, %s5779_s20 }
 0x301   : > { %v1305_v7 = vpop.xlane.xlu0 %1304 }
 0x302   : > { %5658 = vrcp.f32 %v1305_v7 }
 0x304   : > { %1871 = vrot.lane.b32.xlu1 %v5993_v11, %s5779_s20 }
 0x305   : > { %v1302_v57 = vpop.xlane.xlu1 %1301 }
 0x306   : > { %5660 = vrcp.f32 %v1302_v57 }
 0x308   : > { %v5657_v9 = vpop.eup %5656  ;;  %1978 = vrot.lane.b32.xlu1 %v5981_v8, %s5779_s20 }
 0x309   : > { %v1311_v14 = vpop.xlane.xlu0 %1310  ;;  %v1329_v16 = vmul.f32 %v5657_v9, %v6078_v21 }
 0x30a   : > { %5662 = vrcp.f32 %v1311_v14  ;;  %v6220_v14 = vpack.c.bf16 %v6037_v37, %v6037_v37 }
 0x30b   : > { %v1337_v19 = vpack.c.bf16 %v1329_v16, %v1329_v16 }
 0x30c   : > { %v5659_v20 = vpop.eup %5658  ;;  %1975 = vrot.lane.b32.xlu1 %v6011_v17, %s5779_s20  ;;  %v1672_v37 = vsel %vm1348_vm3, %v6220_v14, 0 }
 0x30d   : > { %5195 = vmatmul.mubr.msk.bf16.vlgmr.msra.gmra.mrb[24].mxu0 %vm880_vm2, %v1337_v19  ;;  %v1317_v24 = vpop.xlane.xlu0 %1316  ;;  %v1331_v21 = vmul.f32 %v5659_v20, %v6082_v31  ;;  %v1534_v31 = vsel %vm1348_vm3, %v6162_v53, 0 }
 0x30e   : > { %5205 = vmatpush3.bf16.msra.mxu0 %v1442_v26  ;;  %v1308_v28 = vpop.xlane.xlu1 %1307  ;;  %5206 = vmatprep.mubr.msk.bf16.mxu0 %vm5778_vm1, %v5777_v18 }
 0x30f   : > { %5664 = vrcp.f32 %v1308_v28  ;;  %5216 = vmatprep.subr.bf16.mxu0 %v5777_v18  ;;  %v1339_v33 = vpack.c.bf16 %v1331_v21, %v1331_v21 }
 0x310   : > { %v5661_v29 = vpop.eup %5660  ;;  %2082 = vrot.lane.b32.xlu1 %v6004_v15, %s5779_s20  ;;  %5666 = vrcp.f32 %v1317_v24 }
 0x311   : > { %v1330_v32 = vmul.f32 %v5661_v29, %v6086_v12  ;;  %v1719_v56 = vpop.permute.xlu0 %1718 }
 0x312   : > { %v1724_v44 = vsel %vm880_vm2, %v1719_v56, 0  ;;  %v1771_v61 = vpop.permute.xlu1 %1770 }
 0x313   : > { %v1338_v4 = vpack.c.bf16 %v1330_v32, %v1330_v32 }
 0x314   : > { %v5663_v35 = vpop.eup %5662  ;;  %2079 = vrot.lane.b32.xlu1 %v6020_v22, %s5779_s20 }
 0x315   : > { %5207 = vmatmul.mubr.msk.bf16.vlgmr.msra.gmra.mrb[28].mxu0 %vm880_vm2, %v1339_v33  ;;  %5201 = vmatmul.mubr.msk.bf16.vlgmr.msra.gmra.mrb[32].mxu1 %vm880_vm2, %v1338_v4  ;;  %v1333_v34 = vmul.f32 %v5663_v35, %v6090_v43 }
 0x316   : > { %5217 = vmatpush3.bf16.msra.mxu0 %v1534_v31  ;;  %5211 = vmatpush3.bf16.msra.mxu1 %v1488_v27 }
 0x317   : > { %5212 = vmatprep.mubr.msk.bf16.mxu1 %vm5778_vm1, %v5777_v18  ;;  %5218 = vmatprep.mubr.msk.bf16.mxu0 %vm5778_vm1, %v5777_v18  ;;  %v1341_v52 = vpack.c.bf16 %v1333_v34, %v1333_v34  ;;  %v1776_v34 = vsel %vm880_vm2, %v1771_v61, 0 }
 0x318   : > { %2276 = vrot.lane.b32.xlu1 %v6043_v42, %s5779_s20  ;;  %5222 = vmatprep.subr.bf16.mxu1 %v5777_v18 }
 0x319   : > { %v5665_v12 = vpop.eup %5664  ;;  %5228 = vmatprep.subr.bf16.mxu0 %v5777_v18 }
 0x31a   : > { %v1332_v51 = vmul.f32 %v5665_v12, %v6096_v49  ;;  %v5667_v43 = vpop.eup %5666 }
 0x31b   : > { %v1335_v49 = vmul.f32 %v5667_v43, %v6094_v25  ;;  %v1823_v25 = vpop.permute.xlu0 %1822 }
 0x31c   : > { %2325 = vrot.lane.b32.xlu1 %v6142_v13, %s5779_s20  ;;  %v1340_v55 = vpack.c.bf16 %v1332_v51, %v1332_v51  ;;  %v1828_v7 = vsel %vm880_vm2, %v1823_v25, 0 }
 0x31d   : > { %5219 = vmatmul.mubr.msk.bf16.vlgmr.msra.gmra.mrb[32].mxu0 %vm880_vm2, %v1341_v52  ;;  %v1343_v58 = vpack.c.bf16 %v1335_v49, %v1335_v49 }
 0x31e   : > { %5229 = vmatpush3.bf16.msra.mxu0 %v1626_v30  ;;  %5213 = vmatmul.mubr.msk.bf16.vlgmr.msra.gmra.mrb[36].mxu1 %vm880_vm2, %v1340_v55 }
 0x31f   : > { %5223 = vmatpush3.bf16.msra.mxu1 %v1580_v40  ;;  %5230 = vmatprep.mubr.msk.bf16.mxu0 %vm5778_vm1, %v5777_v18  ;;  %v1820_v63 = vpop.permute.xlu0 %1819 }
 0x320   : > { %2374 = vrot.lane.b32.xlu1 %v6158_v50, %s5779_s20  ;;  %5240 = vmatprep.subr.bf16.mxu0 %v5777_v18 }
 0x321   : > { %5224 = vmatprep.mubr.msk.bf16.mxu1 %vm5778_vm1, %v5777_v18  ;;  %5234 = vmatprep.subr.bf16.mxu1 %v5777_v18 }
 0x323   : > { %v1927_v5 = vpop.permute.xlu0 %1926 }
 0x324   : > { %v1932_v19 = vsel %vm880_vm2, %v1927_v5, 0 }
 0x325   : > { %5231 = vmatmul.mubr.msk.bf16.vlgmr.msra.gmra.mrb[36].mxu0 %vm880_vm2, %v1343_v58 }
 0x326   : > { %5242 = vmatprep.mubr.msk.bf16.mxu0 %vm5778_vm1, %v5777_v18 }
 0x327   : > { %5241 = vmatpush3.bf16.xpose.msra.mxu0 %v1724_v44  ;;  %v1924_v57 = vpop.permute.xlu0 %1923 }
 0x328   : > { %5252 = vmatprep.subr.bf16.mxu0 %v5777_v18 }
 0x32b   : > { %v2031_v20 = vpop.permute.xlu0 %2030 }
 0x32c   : > { %v2036_v28 = vsel %vm880_vm2, %v2031_v20, 0 }
 0x343   : > { %v1314_v1 = vpop.xlane.xlu1 %1313 }
 0x344   : > { %5668 = vrcp.f32 %v1314_v1 }
 0x347   : > { %v1716_v6 = vpop.permute.xlu1 %1715 }
 0x348   : > { %5243 = vmatmul.mubr.msk.bf16.vlgmr.msra.gmra.mrb[40].mxu0 %vm880_vm2, %v1716_v6 }
 0x349   : > { %5253 = vmatpush3.bf16.xpose.msra.mxu0 %v1828_v7  ;;  %5254 = vmatprep.mubr.msk.bf16.mxu0 %vm5778_vm1, %v5777_v18 }
 0x34a   : > { %5264 = vmatprep.subr.bf16.mxu0 %v5777_v18 }
 0x34e   : > { %v5669_v9 = vpop.eup %5668 }
 0x34f   : > { %v1334_v16 = vmul.f32 %v5669_v9, %v6119_v59  ;;  %v2028_v59 = vpop.permute.xlu0 %2027 }
 0x350   : > { %5255 = vmatmul.mubr.msk.bf16.vlgmr.msra.gmra.mrb[44].mxu0 %vm880_vm2, %v1820_v63 }
 0x351   : > { %5265 = vmatpush3.bf16.xpose.msra.mxu0 %v1932_v19  ;;  %v1342_v26 = vpack.c.bf16 %v1334_v16, %v1334_v16  ;;  %5266 = vmatprep.mubr.msk.bf16.mxu0 %vm5778_vm1, %v5777_v18 }
 0x352   : > { %5276 = vmatprep.subr.bf16.mxu0 %v5777_v18 }
 0x353   : > { %5225 = vmatmul.mubr.msk.bf16.vlgmr.msra.gmra.mrb[40].mxu1 %vm880_vm2, %v1342_v26  ;;  %v2228_v24 = vpop.permute.xlu0 %2227 }
 0x354   : > { %5235 = vmatpush3.bf16.msra.mxu1 %v1672_v37  ;;  %5236 = vmatprep.mubr.msk.bf16.mxu1 %vm5778_vm1, %v5777_v18  ;;  %v2233_v21 = vsel %vm1348_vm3, %v2228_v24, 0 }
 0x355   : > { %5246 = vmatprep.subr.bf16.mxu1 %v5777_v18 }
 0x358   : > { %5267 = vmatmul.mubr.msk.bf16.vlgmr.msra.gmra.mrb[48].mxu0 %vm880_vm2, %v1924_v57 }
 0x359   : > { %5277 = vmatpush3.bf16.xpose.msra.mxu0 %v2036_v28  ;;  %5278 = vmatprep.mubr.msk.bf16.mxu0 %vm5778_vm1, %v5777_v18 }
 0x35a   : > { %5288 = vmatprep.subr.bf16.mxu0 %v5777_v18 }
 0x360   : > { %5279 = vmatmul.mubr.msk.bf16.vlgmr.msra.gmra.mrb[52].mxu0 %vm880_vm2, %v2028_v59 }
 0x361   : > { %5289 = vmatpush3.bf16.msra.mxu0 %v2233_v21  ;;  %5290 = vmatprep.mubr.msk.bf16.mxu0 %vm5778_vm1, %v5777_v18 }
 0x362   : > { %5300 = vmatprep.subr.bf16.mxu0 %v5777_v18 }
 0x378   : > { %v1320_v29 = vpop.xlane.xlu1 %1319 }
 0x379   : > { %5670 = vrcp.f32 %v1320_v29 }
 0x37c   : > { %v1768_v32 = vpop.permute.xlu1 %1767 }
 0x380   : > { %v1875_v33 = vpop.permute.xlu1 %1874 }
 0x381   : > { %v1880_v51 = vsel %vm880_vm2, %v1875_v33, 0 }
 0x383   : > { %v5671_v4 = vpop.eup %5670 }
 0x384   : > { %v1336_v35 = vmul.f32 %v5671_v4, %v6128_v3  ;;  %v1872_v27 = vpop.permute.xlu1 %1871 }
 0x386   : > { %v1344_v31 = vpack.c.bf16 %v1336_v35, %v1336_v35 }
 0x388   : > { %5237 = vmatmul.mubr.msk.bf16.vlgmr.msra.gmra.mrb[44].mxu1 %vm880_vm2, %v1344_v31  ;;  %v1979_v12 = vpop.permute.xlu1 %1978 }
 0x389   : > { %5247 = vmatpush3.bf16.xpose.msra.mxu1 %v1776_v34  ;;  %5248 = vmatprep.mubr.msk.bf16.mxu1 %vm5778_vm1, %v5777_v18  ;;  %v1984_v52 = vsel %vm880_vm2, %v1979_v12, 0 }
 0x38a   : > { %5258 = vmatprep.subr.bf16.mxu1 %v5777_v18 }
 0x38c   : > { %v1976_v3 = vpop.permute.xlu1 %1975 }
 0x390   : > { %5249 = vmatmul.mubr.msk.bf16.vlgmr.msra.gmra.mrb[48].mxu1 %vm880_vm2, %v1768_v32  ;;  %v2083_v43 = vpop.permute.xlu1 %2082 }
 0x391   : > { %5259 = vmatpush3.bf16.xpose.msra.mxu1 %v1880_v51  ;;  %5260 = vmatprep.mubr.msk.bf16.mxu1 %vm5778_vm1, %v5777_v18  ;;  %v2088_v30 = vsel %vm880_vm2, %v2083_v43, 0 }
 0x392   : > { %5270 = vmatprep.subr.bf16.mxu1 %v5777_v18 }
 0x394   : > { %v2080_v55 = vpop.permute.xlu1 %2079 }
 0x398   : > { %5261 = vmatmul.mubr.msk.bf16.vlgmr.msra.gmra.mrb[52].mxu1 %vm880_vm2, %v1872_v27  ;;  %v2277_v40 = vpop.permute.xlu1 %2276 }
 0x399   : > { %5271 = vmatpush3.bf16.xpose.msra.mxu1 %v1984_v52  ;;  %5272 = vmatprep.mubr.msk.bf16.mxu1 %vm5778_vm1, %v5777_v18  ;;  %v2282_v49 = vsel %vm1348_vm3, %v2277_v40, 0 }
 0x39a   : > { %5282 = vmatprep.subr.bf16.mxu1 %v5777_v18 }
 0x3a0   : > { %5273 = vmatmul.mubr.msk.bf16.vlgmr.msra.gmra.mrb[56].mxu1 %vm880_vm2, %v1976_v3 }
 0x3a1   : > { %5283 = vmatpush3.bf16.xpose.msra.mxu1 %v2088_v30  ;;  %5284 = vmatprep.mubr.msk.bf16.mxu1 %vm5778_vm1, %v5777_v18 }
 0x3a2   : > { %5294 = vmatprep.subr.bf16.mxu1 %v5777_v18 }
 0x3a8   : > { %5285 = vmatmul.mubr.msk.bf16.vlgmr.msra.gmra.mrb[60].mxu1 %vm880_vm2, %v2080_v55 }
 0x3a9   : > { %5295 = vmatpush3.bf16.msra.mxu1 %v2282_v49  ;;  %5296 = vmatprep.mubr.msk.bf16.mxu1 %vm5778_vm1, %v5777_v18 }
 0x3aa   : > { %5306 = vmatprep.subr.bf16.mxu1 %v5777_v18 }
 0x3e0   : > { %v6270_v56 = vpop.f32.mrb[24].mxu0 }
 0x3e1   : > { %v5196_v58 = vpop.f32.mrb[25].mxu0 }
 0x3e2   : > { %v1389_v44 = vpop.f32.mrb[26].mxu0 }
 0x3e3   : > { %v5197_v25 = vpop.f32.mrb[27].mxu0 }
 0x3e8   : > { %v6272_v61 = vpop.f32.mrb[32].mxu1  ;;  %v6274_v63 = vpop.f32.mrb[28].mxu0 }
 0x3e9   : > { %v5202_v1 = vpop.f32.mrb[33].mxu1  ;;  %v5208_v5 = vpop.f32.mrb[29].mxu0 }
 0x3ea   : > { %v1435_v6 = vpop.f32.mrb[34].mxu1  ;;  %v1481_v7 = vpop.f32.mrb[30].mxu0 }
 0x3eb   : > { %v5203_v57 = vpop.f32.mrb[35].mxu1  ;;  %v5209_v9 = vpop.f32.mrb[31].mxu0 }
 0x3f0   : > { %v6276_v16 = vpop.f32.mrb[32].mxu0 }
 0x3f1   : > { %v6278_v19 = vpop.f32.mrb[36].mxu1  ;;  %v5220_v20 = vpop.f32.mrb[33].mxu0 }
 0x3f2   : > { %v5214_v26 = vpop.f32.mrb[37].mxu1  ;;  %v1573_v37 = vpop.f32.mrb[34].mxu0 }
 0x3f3   : > { %v1527_v59 = vpop.f32.mrb[38].mxu1  ;;  %v5221_v28 = vpop.f32.mrb[35].mxu0 }
 0x3f4   : > { %v5215_v24 = vpop.f32.mrb[39].mxu1 }
 0x3f8   : > { %v6280_v21 = vpop.f32.mrb[36].mxu0 }
 0x3f9   : > { %v5232_v29 = vpop.f32.mrb[37].mxu0 }
 0x3fa   : > { %v1665_v32 = vpop.f32.mrb[38].mxu0 }
 0x3fb   : > { %v5233_v33 = vpop.f32.mrb[39].mxu0 }
 0x41b   : > { %v1760_v4 = vpop.f32.mrb[40].mxu0 }
 0x41c   : > { %v6283_v35 = vadd.f32 %v1760_v4, %v6054_v46  ;;  %v5244_v31 = vpop.f32.mrb[41].mxu0 }
 0x41d   : > { %v1763_v27 = vpop.f32.mrb[42].mxu0 }
 0x41e   : > { %v5245_v34 = vpop.f32.mrb[43].mxu0  ;;  %v2130_v12 = vsel %vm880_vm2, %v6283_v35, -inf }
 0x41f   : > { %2131 = vmax.xlane.f32.xlu0 %v2130_v12 }
 0x423   : > { %v1864_v51 = vpop.f32.mrb[44].mxu0 }
 0x424   : > { %v6288_v3 = vadd.f32 %v1864_v51, %v6054_v46  ;;  %v5256_v52 = vpop.f32.mrb[45].mxu0 }
 0x425   : > { %v1867_v43 = vpop.f32.mrb[46].mxu0 }
 0x426   : > { %v6290_v55 = vpop.f32.mrb[40].mxu1  ;;  %v5257_v30 = vpop.f32.mrb[47].mxu0  ;;  %v2136_v40 = vsel %vm880_vm2, %v6288_v3, -inf }
 0x427   : > { %2137 = vmax.xlane.f32.xlu0 %v2136_v40  ;;  %v5226_v49 = vpop.f32.mrb[41].mxu1 }
 0x428   : > { %v1619_v58 = vpop.f32.mrb[42].mxu1 }
 0x429   : > { %v5227_v44 = vpop.f32.mrb[43].mxu1 }
 0x42b   : > { %v1968_v25 = vpop.f32.mrb[48].mxu0 }
 0x42c   : > { %v5268_v1 = vpop.f32.mrb[49].mxu0  ;;  %v1969_v52 = vadd.f32 %v1968_v25, %v6054_v46 }
 0x42d   : > { %v1971_v5 = vpop.f32.mrb[50].mxu0 }
 0x42e   : > { %v5269_v6 = vpop.f32.mrb[51].mxu0  ;;  %v2142_v49 = vsel %vm880_vm2, %v1969_v52, -inf }
 0x433   : > { %v2072_v7 = vpop.f32.mrb[52].mxu0 }
 0x434   : > { %v5280_v57 = vpop.f32.mrb[53].mxu0  ;;  %v6302_v40 = vadd.f32 %v2072_v7, %v6054_v46 }
 0x435   : > { %v2075_v9 = vpop.f32.mrb[54].mxu0 }
 0x436   : > { %v5281_v20 = vpop.f32.mrb[55].mxu0  ;;  %v2148_v57 = vsel %vm880_vm2, %v6302_v40, -inf }
 0x45b   : > { %v6294_v26 = vpop.f32.mrb[44].mxu1 }
 0x45c   : > { %v5238_v37 = vpop.f32.mrb[45].mxu1 }
 0x45d   : > { %v1711_v59 = vpop.f32.mrb[46].mxu1 }
 0x45e   : > { %v5239_v28 = vpop.f32.mrb[47].mxu1 }
 0x463   : > { %v1812_v24 = vpop.f32.mrb[48].mxu1 }
 0x464   : > { %v1813_v29 = vadd.f32 %v1812_v24, %v6054_v46  ;;  %v5250_v32 = vpop.f32.mrb[49].mxu1 }
 0x465   : > { %v1815_v33 = vpop.f32.mrb[50].mxu1 }
 0x466   : > { %v5251_v4 = vpop.f32.mrb[51].mxu1  ;;  %v2133_v31 = vsel %vm880_vm2, %v1813_v29, -inf }
 0x467   : > { %2134 = vmax.xlane.f32.xlu1 %v2133_v31 }
 0x46b   : > { %v1916_v27 = vpop.f32.mrb[52].mxu1 }
 0x46c   : > { %v1917_v34 = vadd.f32 %v1916_v27, %v6054_v46  ;;  %v5262_v12 = vpop.f32.mrb[53].mxu1 }
 0x46d   : > { %v1919_v51 = vpop.f32.mrb[54].mxu1 }
 0x46e   : > { %v5263_v43 = vpop.f32.mrb[55].mxu1  ;;  %v2139_v30 = vsel %vm880_vm2, %v1917_v34, -inf }
 0x46f   : > { %2140 = vmax.xlane.f32.xlu0 %v2139_v30  ;;  %v2326_v30 = vpop.permute.xlu1 %2325 }
 0x473   : > { %2143 = vmax.xlane.f32.xlu0 %v2142_v49  ;;  %v2020_v58 = vpop.f32.mrb[56].mxu1  ;;  %v6322_v49 = vpop.permute.xlu1 %2374 }
 0x474   : > { %v2021_v44 = vadd.f32 %v2020_v58, %v6054_v46  ;;  %v5274_v1 = vpop.f32.mrb[57].mxu1 }
 0x475   : > { %v2023_v5 = vpop.f32.mrb[58].mxu1 }
 0x476   : > { %v5275_v6 = vpop.f32.mrb[59].mxu1  ;;  %v2145_v25 = vsel %vm880_vm2, %v2021_v44, -inf }
 0x477   : > { %2149 = vmax.xlane.f32.xlu0 %v2148_v57  ;;  %2146 = vmax.xlane.f32.xlu1 %v2145_v25 }
 0x47b   : > { %v2124_v9 = vpop.f32.mrb[60].mxu1 }
 0x47c   : > { %v5286_v20 = vpop.f32.mrb[61].mxu1  ;;  %v6314_v59 = vadd.f32 %v2124_v9, %v6054_v46 }
 0x47d   : > { %v2127_v7 = vpop.f32.mrb[62].mxu1 }
 0x47e   : > { %v5287_v37 = vpop.f32.mrb[63].mxu1  ;;  %v2151_v28 = vsel %vm880_vm2, %v6314_v59, -inf }
 0x488   : > { %2472 = vrot.lane.b32.xlu1 %v6188_v23, %s5779_s20 }
 0x48d   : > { %2423 = vrot.lane.b32.xlu0 %v6162_v53, %s5779_s20 }
 0x4ac   : > { %v2132_v24 = vpop.xlane.xlu0 %2131  ;;  %2152 = vmax.xlane.f32.xlu1 %v2151_v28 }
 0x4ad   : > { %v2154_v32 = vsub.f32 %v6283_v35, %v2132_v24 }
 0x4af   : > { %v2162_v33 = vmul.f32 1.442695, %v2154_v32 }
 0x4b1   : > { %5672 = vpow2.f32 %v2162_v33 }
 0x4b4   : > { %v2138_v4 = vpop.xlane.xlu0 %2137 }
 0x4b5   : > { %v2156_v31 = vsub.f32 %v6288_v3, %v2138_v4 }
 0x4b7   : > { %v2166_v27 = vmul.f32 1.442695, %v2156_v31 }
 0x4b9   : > { %5674 = vpow2.f32 %v2166_v27 }
 0x4bb   : > { %v5673_v12 = vpop.eup %5672 }
 0x4bc   : > { %v2178_v51 = vsel %vm880_vm2, %v5673_v12, 0.0 }
 0x4bd   : > { %2179 = vadd.xlane.f32.xlu0 %v2178_v51 }
 0x4c3   : > { %v5675_v46 = vpop.eup %5674 }
 0x4c4   : > { %v2184_v43 = vsel %vm880_vm2, %v5675_v46, 0.0 }
 0x4c5   : > { %2185 = vadd.xlane.f32.xlu0 %v2184_v43 }
 0x4f4   : > { %v2135_v58 = vpop.xlane.xlu1 %2134 }
 0x4f5   : > { %v2155_v35 = vsub.f32 %v1813_v29, %v2135_v58 }
 0x4f7   : > { %v2164_v1 = vmul.f32 1.442695, %v2155_v35 }
 0x4f9   : > { %5676 = vpow2.f32 %v2164_v1 }
 0x4fc   : > { %v2141_v5 = vpop.xlane.xlu0 %2140 }
 0x4fd   : > { %v2157_v6 = vsub.f32 %v1917_v34, %v2141_v5 }
 0x4ff   : > { %v2168_v3 = vmul.f32 1.442695, %v2157_v6 }
 0x500   : > { %v2144_v57 = vpop.xlane.xlu0 %2143 }
 0x501   : > { %5678 = vpow2.f32 %v2168_v3  ;;  %v2158_v25 = vsub.f32 %v1969_v52, %v2144_v57  ;;  %v2331_v3 = vsel %vm1348_vm3, %v2326_v30, 0 }
 0x503   : > { %v6324_v9 = vpop.eup %5676  ;;  %v2170_v20 = vmul.f32 1.442695, %v2158_v25 }
 0x504   : > { %v2181_v7 = vsel %vm880_vm2, %v6324_v9, 0.0  ;;  %v2147_v52 = vpop.xlane.xlu1 %2146  ;;  %v2150_v32 = vpop.xlane.xlu0 %2149 }
 0x505   : > { %5680 = vpow2.f32 %v2170_v20  ;;  %2182 = vadd.xlane.f32.xlu1 %v2181_v7  ;;  %v2159_v24 = vsub.f32 %v2021_v44, %v2147_v52  ;;  %v2160_v33 = vsub.f32 %v6302_v40, %v2150_v32 }
 0x507   : > { %v2172_v4 = vmul.f32 1.442695, %v2159_v24  ;;  %v2174_v31 = vmul.f32 1.442695, %v2160_v33 }
 0x508   : > { %v2424_v35 = vpop.permute.xlu0 %2423  ;;  %v2473_v57 = vpop.permute.xlu1 %2472 }
 0x509   : > { %5682 = vpow2.f32 %v2172_v4 }
 0x50a   : > { %5684 = vpow2.f32 %v2174_v31 }
 0x50b   : > { %v6328_v37 = vpop.eup %5678 }
 0x50c   : > { %v2187_v29 = vsel %vm880_vm2, %v6328_v37, 0.0 }
 0x50d   : > { %2188 = vadd.xlane.f32.xlu1 %v2187_v29  ;;  %v2429_v29 = vsel %vm1348_vm3, %v2424_v35, 0 }
 0x50f   : > { %v6332_v28 = vpop.eup %5680 }
 0x510   : > { %v2190_v34 = vsel %vm880_vm2, %v6332_v28, 0.0 }
 0x511   : > { %2191 = vadd.xlane.f32.xlu0 %v2190_v34 }
 0x513   : > { %v6341_v27 = vpop.eup %5682 }
 0x514   : > { %v2193_v51 = vsel %vm880_vm2, %v6341_v27, 0.0  ;;  %v6345_v43 = vpop.eup %5684 }
 0x515   : > { %v2196_v58 = vsel %vm880_vm2, %v6345_v43, 0.0 }
 0x51e   : > { %2570 = vrot.lane.b32.xlu1 %v6220_v14, %s5779_s20 }
 0x527   : > { %2521 = vrot.lane.b32.xlu0 %v6183_v39, %s5779_s20 }
 0x539   : > { %v2153_v20 = vpop.xlane.xlu1 %2152 }
 0x53a   : > { %v2161_v30 = vsub.f32 %v6314_v59, %v2153_v20 }
 0x542   : > { %2194 = vadd.xlane.f32.xlu1 %v2193_v51  ;;  %v2380_v51 = vsel %vm1348_vm3, %v6322_v49, 0  ;;  %v2478_v49 = vsel %vm1348_vm3, %v2473_v57, 0 }
 0x546   : > { %2197 = vadd.xlane.f32.xlu0 %v2196_v58 }
 0x54a   : > { %v2180_v44 = vpop.xlane.xlu0 %2179 }
 0x54b   : > { %5686 = vrcp.f32 %v2180_v44 }
 0x552   : > { %v2186_v40 = vpop.xlane.xlu0 %2185 }
 0x553   : > { %5688 = vrcp.f32 %v2186_v40  ;;  %2670 = vrot.lane.b32.xlu1 %v5937_v47, %s5780_s22 }
 0x555   : > { %v5687_v1 = vpop.eup %5686 }
 0x556   : > { %v2210_v5 = vmul.f32 %v5687_v1, %v5673_v12 }
 0x558   : > { %v2218_v6 = vpack.c.bf16 %v2210_v5, %v2210_v5 }
 0x55a   : > { %5291 = vmatmul.mubr.msk.bf16.vlgmr.msra.gmra.mrb[56].mxu0 %vm880_vm2, %v2218_v6 }
 0x55b   : > { %5301 = vmatpush3.bf16.msra.mxu0 %v2331_v3  ;;  %5302 = vmatprep.mubr.msk.bf16.mxu0 %vm5778_vm1, %v5777_v18 }
 0x55c   : > { %2620 = vrot.lane.b32.xlu0 %v5926_v38, %s5780_s22  ;;  %5312 = vmatprep.subr.bf16.mxu0 %v5777_v18 }
 0x55d   : > { %v5689_v25 = vpop.eup %5688 }
 0x55e   : > { %v2212_v7 = vmul.f32 %v5689_v25, %v5675_v46  ;;  %v2176_v46 = vmul.f32 1.442695, %v2161_v30 }
 0x560   : > { %2618 = vrot.lane.b32.xlu0 %v5939_v48, %s5780_s22  ;;  %v2220_v12 = vpack.c.bf16 %v2212_v7, %v2212_v7  ;;  %5690 = vpow2.f32 %v2176_v46 }
 0x562   : > { %5303 = vmatmul.mubr.msk.bf16.vlgmr.msra.gmra.mrb[60].mxu0 %vm880_vm2, %v2220_v12 }
 0x563   : > { %5313 = vmatpush3.bf16.msra.mxu0 %v2429_v29  ;;  %5314 = vmatprep.mubr.msk.bf16.mxu0 %vm5778_vm1, %v5777_v18 }
 0x564   : > { %2720 = vrot.lane.b32.xlu0 %v5924_v36, %s5780_s22  ;;  %5324 = vmatprep.subr.bf16.mxu0 %v5777_v18 }
 0x568   : > { %2718 = vrot.lane.b32.xlu0 %v5935_v45, %s5780_s22 }
 0x56a   : > { %v6374_v59 = vpop.eup %5690 }
 0x56b   : > { %v2199_v34 = vsel %vm880_vm2, %v6374_v59, 0.0 }
 0x56c   : > { %2820 = vrot.lane.b32.xlu0 %v5944_v54, %s5780_s22 }
 0x570   : > { %2818 = vrot.lane.b32.xlu0 %v5967_v0, %s5780_s22 }
 0x574   : > { %2920 = vrot.lane.b32.xlu0 %v5958_v60, %s5780_s22 }
 0x577   : > { %2200 = vadd.xlane.f32.xlu1 %v2199_v34 }
 0x578   : > { %2918 = vrot.lane.b32.xlu0 %v5991_v10, %s5780_s22 }
 0x57c   : > { %3114 = vrot.lane.b32.xlu0 %v6041_v41, %s5780_s22 }
 0x588   : > { %2668 = vrot.lane.b32.xlu1 %v5970_v2, %s5780_s22 }
 0x58c   : > { %2770 = vrot.lane.b32.xlu1 %v5964_v62, %s5780_s22 }
 0x590   : > { %2768 = vrot.lane.b32.xlu1 %v5993_v11, %s5780_s22 }
 0x592   : > { %v2183_v52 = vpop.xlane.xlu1 %2182 }
 0x593   : > { %5692 = vrcp.f32 %v2183_v52 }
 0x594   : > { %2870 = vrot.lane.b32.xlu1 %v5981_v8, %s5780_s22 }
 0x598   : > { %2868 = vrot.lane.b32.xlu1 %v6011_v17, %s5780_s22 }
 0x59a   : > { %v2189_v24 = vpop.xlane.xlu1 %2188 }
 0x59b   : > { %5694 = vrcp.f32 %v2189_v24 }
 0x59c   : > { %2970 = vrot.lane.b32.xlu1 %v6004_v15, %s5780_s22 }
 0x59d   : > { %v5693_v32 = vpop.eup %5692 }
 0x59e   : > { %v2192_v33 = vpop.xlane.xlu0 %2191  ;;  %v2211_v4 = vmul.f32 %v5693_v32, %v6324_v9 }
 0x59f   : > { %5696 = vrcp.f32 %v2192_v33 }
 0x5a0   : > { %2968 = vrot.lane.b32.xlu1 %v6020_v22, %s5780_s22  ;;  %v2219_v31 = vpack.c.bf16 %v2211_v4, %v2211_v4 }
 0x5a2   : > { %5297 = vmatmul.mubr.msk.bf16.vlgmr.msra.gmra.mrb[64].mxu1 %vm880_vm2, %v2219_v31  ;;  %v2522_v1 = vpop.permute.xlu0 %2521 }
 0x5a3   : > { %5307 = vmatpush3.bf16.msra.mxu1 %v2380_v51  ;;  %5308 = vmatprep.mubr.msk.bf16.mxu1 %vm5778_vm1, %v5777_v18  ;;  %v2527_v5 = vsel %vm1348_vm3, %v2522_v1, 0 }
 0x5a4   : > { %3162 = vrot.lane.b32.xlu1 %v6043_v42, %s5780_s22  ;;  %5318 = vmatprep.subr.bf16.mxu1 %v5777_v18 }
 0x5a5   : > { %v5695_v9 = vpop.eup %5694 }
 0x5a6   : > { %v2213_v58 = vmul.f32 %v5695_v9, %v6328_v37 }
 0x5a8   : > { %3210 = vrot.lane.b32.xlu1 %v6142_v13, %s5780_s22  ;;  %v2221_v35 = vpack.c.bf16 %v2213_v58, %v2213_v58 }
 0x5a9   : > { %v5697_v44 = vpop.eup %5696 }
 0x5aa   : > { %v2214_v40 = vmul.f32 %v5697_v44, %v6332_v28  ;;  %5309 = vmatmul.mubr.msk.bf16.vlgmr.msra.gmra.mrb[68].mxu1 %vm880_vm2, %v2221_v35  ;;  %v2571_v28 = vpop.permute.xlu1 %2570 }
 0x5ab   : > { %5319 = vmatpush3.bf16.msra.mxu1 %v2478_v49  ;;  %5320 = vmatprep.mubr.msk.bf16.mxu1 %vm5778_vm1, %v5777_v18  ;;  %v2576_v29 = vsel %vm1348_vm3, %v2571_v28, 0 }
 0x5ac   : > { %3258 = vrot.lane.b32.xlu1 %v6158_v50, %s5780_s22  ;;  %v2222_v37 = vpack.c.bf16 %v2214_v40, %v2214_v40  ;;  %5330 = vmatprep.subr.bf16.mxu1 %v5777_v18 }
 0x5ae   : > { %5315 = vmatmul.mubr.msk.bf16.vlgmr.msra.gmra.mrb[64].mxu0 %vm880_vm2, %v2222_v37 }
 0x5af   : > { %5325 = vmatpush3.bf16.msra.mxu0 %v2527_v5  ;;  %5326 = vmatprep.mubr.msk.bf16.mxu0 %vm5778_vm1, %v5777_v18 }
 0x5b0   : > { %5336 = vmatprep.subr.bf16.mxu0 %v5777_v18 }
 0x5cf   : > { %v2195_v6 = vpop.xlane.xlu1 %2194 }
 0x5d0   : > { %5698 = vrcp.f32 %v2195_v6 }
 0x5d3   : > { %v2198_v3 = vpop.xlane.xlu0 %2197  ;;  %v2671_v58 = vpop.permute.xlu1 %2670 }
 0x5d4   : > { %5700 = vrcp.f32 %v2198_v3  ;;  %v2676_v3 = vsel %vm880_vm2, %v2671_v58, 0 }
 0x5d7   : > { %v2621_v57 = vpop.permute.xlu0 %2620 }
 0x5d8   : > { %v2626_v24 = vsel %vm880_vm2, %v2621_v57, 0 }
 0x5da   : > { %v5699_v25 = vpop.eup %5698 }
 0x5db   : > { %v2215_v20 = vmul.f32 %v5699_v25, %v6341_v27  ;;  %v2619_v7 = vpop.permute.xlu0 %2618 }
 0x5dd   : > { %v2223_v12 = vpack.c.bf16 %v2215_v20, %v2215_v20 }
 0x5de   : > { %v5701_v30 = vpop.eup %5700 }
 0x5df   : > { %v2216_v46 = vmul.f32 %v5701_v30, %v6345_v43  ;;  %v2721_v34 = vpop.permute.xlu0 %2720  ;;  %5321 = vmatmul.mubr.msk.bf16.vlgmr.msra.gmra.mrb[72].mxu1 %vm880_vm2, %v2223_v12 }
 0x5e0   : > { %5331 = vmatpush3.bf16.msra.mxu1 %v2576_v29  ;;  %5332 = vmatprep.mubr.msk.bf16.mxu1 %vm5778_vm1, %v5777_v18  ;;  %v2726_v32 = vsel %vm880_vm2, %v2721_v34, 0 }
 0x5e1   : > { %v2224_v52 = vpack.c.bf16 %v2216_v46, %v2216_v46  ;;  %5342 = vmatprep.subr.bf16.mxu1 %v5777_v18 }
 0x5e3   : > { %5327 = vmatmul.mubr.msk.bf16.vlgmr.msra.gmra.mrb[68].mxu0 %vm880_vm2, %v2224_v52  ;;  %v2719_v27 = vpop.permute.xlu0 %2718 }
 0x5e4   : > { %5337 = vmatpush3.bf16.xpose.msra.mxu0 %v2626_v24  ;;  %5338 = vmatprep.mubr.msk.bf16.mxu0 %vm5778_vm1, %v5777_v18 }
 0x5e5   : > { %5348 = vmatprep.subr.bf16.mxu0 %v5777_v18 }
 0x5e7   : > { %v2821_v43 = vpop.permute.xlu0 %2820 }
 0x5e8   : > { %v2826_v4 = vsel %vm880_vm2, %v2821_v43, 0 }
 0x5eb   : > { %5339 = vmatmul.mubr.msk.bf16.vlgmr.msra.gmra.mrb[72].mxu0 %vm880_vm2, %v2619_v7  ;;  %v2819_v33 = vpop.permute.xlu0 %2818 }
 0x5ec   : > { %5349 = vmatpush3.bf16.xpose.msra.mxu0 %v2726_v32  ;;  %5350 = vmatprep.mubr.msk.bf16.mxu0 %vm5778_vm1, %v5777_v18 }
 0x5ed   : > { %5360 = vmatprep.subr.bf16.mxu0 %v5777_v18 }
 0x5ef   : > { %v2921_v31 = vpop.permute.xlu0 %2920 }
 0x5f0   : > { %v2926_v9 = vsel %vm880_vm2, %v2921_v31, 0 }
 0x5f3   : > { %5351 = vmatmul.mubr.msk.bf16.vlgmr.msra.gmra.mrb[76].mxu0 %vm880_vm2, %v2719_v27  ;;  %v2919_v51 = vpop.permute.xlu0 %2918 }
 0x5f4   : > { %5361 = vmatpush3.bf16.xpose.msra.mxu0 %v2826_v4  ;;  %5362 = vmatprep.mubr.msk.bf16.mxu0 %vm5778_vm1, %v5777_v18 }
 0x5f5   : > { %5372 = vmatprep.subr.bf16.mxu0 %v5777_v18 }
 0x5f7   : > { %v3115_v35 = vpop.permute.xlu0 %3114 }
 0x5f8   : > { %v3120_v44 = vsel %vm1348_vm3, %v3115_v35, 0 }
 0x5fb   : > { %5363 = vmatmul.mubr.msk.bf16.vlgmr.msra.gmra.mrb[80].mxu0 %vm880_vm2, %v2819_v33 }
 0x5fc   : > { %5373 = vmatpush3.bf16.xpose.msra.mxu0 %v2926_v9  ;;  %5374 = vmatprep.mubr.msk.bf16.mxu0 %vm5778_vm1, %v5777_v18 }
 0x5fd   : > { %5384 = vmatprep.subr.bf16.mxu0 %v5777_v18 }
 0x603   : > { %5375 = vmatmul.mubr.msk.bf16.vlgmr.msra.gmra.mrb[84].mxu0 %vm880_vm2, %v2919_v51 }
 0x604   : > { %5385 = vmatpush3.bf16.msra.mxu0 %v3120_v44  ;;  %v2201_v49 = vpop.xlane.xlu1 %2200  ;;  %5386 = vmatprep.mubr.msk.bf16.mxu0 %vm5778_vm1, %v5777_v18 }
 0x605   : > { %5702 = vrcp.f32 %v2201_v49  ;;  %5396 = vmatprep.subr.bf16.mxu0 %v5777_v18 }
 0x608   : > { %v2669_v40 = vpop.permute.xlu1 %2668 }
 0x60c   : > { %v2771_v1 = vpop.permute.xlu1 %2770 }
 0x60d   : > { %v2776_v25 = vsel %vm880_vm2, %v2771_v1, 0 }
 0x60f   : > { %v5703_v37 = vpop.eup %5702 }
 0x610   : > { %v2217_v5 = vmul.f32 %v5703_v37, %v6374_v59  ;;  %v2769_v6 = vpop.permute.xlu1 %2768 }
 0x612   : > { %v2225_v28 = vpack.c.bf16 %v2217_v5, %v2217_v5 }
 0x614   : > { %5333 = vmatmul.mubr.msk.bf16.vlgmr.msra.gmra.mrb[76].mxu1 %vm880_vm2, %v2225_v28  ;;  %v2871_v57 = vpop.permute.xlu1 %2870 }
 0x615   : > { %5343 = vmatpush3.bf16.xpose.msra.mxu1 %v2676_v3  ;;  %5344 = vmatprep.mubr.msk.bf16.mxu1 %vm5778_vm1, %v5777_v18  ;;  %v2876_v20 = vsel %vm880_vm2, %v2871_v57, 0 }
 0x616   : > { %5354 = vmatprep.subr.bf16.mxu1 %v5777_v18 }
 0x618   : > { %v2869_v59 = vpop.permute.xlu1 %2868 }
 0x61c   : > { %5345 = vmatmul.mubr.msk.bf16.vlgmr.msra.gmra.mrb[80].mxu1 %vm880_vm2, %v2669_v40  ;;  %v2971_v7 = vpop.permute.xlu1 %2970 }
 0x61d   : > { %5355 = vmatpush3.bf16.xpose.msra.mxu1 %v2776_v25  ;;  %5356 = vmatprep.mubr.msk.bf16.mxu1 %vm5778_vm1, %v5777_v18  ;;  %v2976_v30 = vsel %vm880_vm2, %v2971_v7, 0 }
 0x61e   : > { %5366 = vmatprep.subr.bf16.mxu1 %v5777_v18 }
 0x620   : > { %v2969_v12 = vpop.permute.xlu1 %2968 }
 0x624   : > { %5357 = vmatmul.mubr.msk.bf16.vlgmr.msra.gmra.mrb[84].mxu1 %vm880_vm2, %v2769_v6  ;;  %v3163_v24 = vpop.permute.xlu1 %3162 }
 0x625   : > { %5367 = vmatpush3.bf16.xpose.msra.mxu1 %v2876_v20  ;;  %5368 = vmatprep.mubr.msk.bf16.mxu1 %vm5778_vm1, %v5777_v18  ;;  %v3168_v27 = vsel %vm1348_vm3, %v3163_v24, 0  ;;  %v6504_v24 = vld [vmem:[%s6952_s3] sm:$0xff] }
 0x626   : > { %5378 = vmatprep.subr.bf16.mxu1 %v5777_v18 }
 0x62c   : > { %5369 = vmatmul.mubr.msk.bf16.vlgmr.msra.gmra.mrb[88].mxu1 %vm880_vm2, %v2869_v59 }
 0x62d   : > { %5379 = vmatpush3.bf16.xpose.msra.mxu1 %v2976_v30  ;;  %v6473_v29 = vpop.f32.mrb[56].mxu0  ;;  %5380 = vmatprep.mubr.msk.bf16.mxu1 %vm5778_vm1, %v5777_v18 }
 0x62e   : > { %v5292_v46 = vpop.f32.mrb[57].mxu0  ;;  %5390 = vmatprep.subr.bf16.mxu1 %v5777_v18 }
 0x62f   : > { %v2272_v34 = vpop.f32.mrb[58].mxu0 }
 0x630   : > { %v5293_v52 = vpop.f32.mrb[59].mxu0 }
 0x634   : > { %5381 = vmatmul.mubr.msk.bf16.vlgmr.msra.gmra.mrb[92].mxu1 %vm880_vm2, %v2969_v12 }
 0x635   : > { %5391 = vmatpush3.bf16.msra.mxu1 %v3168_v27  ;;  %v6480_v43 = vpop.f32.mrb[60].mxu0  ;;  %5392 = vmatprep.mubr.msk.bf16.mxu1 %vm5778_vm1, %v5777_v18 }
 0x636   : > { %v5304_v32 = vpop.f32.mrb[61].mxu0  ;;  %5402 = vmatprep.subr.bf16.mxu1 %v5777_v18 }
 0x637   : > { %v2370_v33 = vpop.f32.mrb[62].mxu0 }
 0x638   : > { %v5305_v4 = vpop.f32.mrb[63].mxu0 }
 0x675   : > { %v6485_v31 = vpop.f32.mrb[64].mxu1 }
 0x676   : > { %v5298_v9 = vpop.f32.mrb[65].mxu1 }
 0x677   : > { %v2321_v58 = vpop.f32.mrb[66].mxu1 }
 0x678   : > { %v5299_v35 = vpop.f32.mrb[67].mxu1 }
 0x67d   : > { %v6489_v44 = vpop.f32.mrb[68].mxu1 }
 0x67e   : > { %v5310_v40 = vpop.f32.mrb[69].mxu1 }
 0x67f   : > { %v2419_v1 = vpop.f32.mrb[70].mxu1 }
 0x680   : > { %v5311_v37 = vpop.f32.mrb[71].mxu1 }
 0x681   : > { %v6493_v5 = vpop.f32.mrb[64].mxu0 }
 0x682   : > { %v5316_v28 = vpop.f32.mrb[65].mxu0 }
 0x683   : > { %v2468_v6 = vpop.f32.mrb[66].mxu0 }
 0x684   : > { %v5317_v3 = vpop.f32.mrb[67].mxu0 }
 0x6b2   : > { %v6495_v57 = vpop.f32.mrb[72].mxu1 }
 0x6b3   : > { %v5322_v59 = vpop.f32.mrb[73].mxu1 }
 0x6b4   : > { %v2517_v20 = vpop.f32.mrb[74].mxu1 }
 0x6b5   : > { %v5323_v7 = vpop.f32.mrb[75].mxu1 }
 0x6b6   : > { %v6499_v12 = vpop.f32.mrb[68].mxu0 }
 0x6b7   : > { %v5328_v30 = vpop.f32.mrb[69].mxu0 }
 0x6b8   : > { %v2566_v46 = vpop.f32.mrb[70].mxu0 }
 0x6b9   : > { %v5329_v34 = vpop.f32.mrb[71].mxu0 }
 0x6be   : > { %v2662_v52 = vpop.f32.mrb[72].mxu0 }
 0x6bf   : > { %v6507_v27 = vadd.f32 %v6504_v24, %v2662_v52  ;;  %v5340_v32 = vpop.f32.mrb[73].mxu0 }
 0x6c0   : > { %v2665_v33 = vpop.f32.mrb[74].mxu0 }
 0x6c1   : > { %v5341_v4 = vpop.f32.mrb[75].mxu0  ;;  %v3018_v9 = vsel %vm880_vm2, %v6507_v27, -inf }
 0x6c2   : > { %3019 = vmax.xlane.f32.xlu0 %v3018_v9 }
 0x6c6   : > { %v2762_v58 = vpop.f32.mrb[76].mxu0 }
 0x6c7   : > { %v2763_v35 = vadd.f32 %v6504_v24, %v2762_v58  ;;  %v5352_v40 = vpop.f32.mrb[77].mxu0 }
 0x6c8   : > { %v2765_v1 = vpop.f32.mrb[78].mxu0 }
 0x6c9   : > { %v5353_v37 = vpop.f32.mrb[79].mxu0  ;;  %v3024_v28 = vsel %vm880_vm2, %v2763_v35, -inf }
 0x6ca   : > { %3025 = vmax.xlane.f32.xlu0 %v3024_v28 }
 0x6ce   : > { %v2862_v6 = vpop.f32.mrb[80].mxu0 }
 0x6cf   : > { %v5364_v3 = vpop.f32.mrb[81].mxu0 }
 0x6d0   : > { %v2865_v59 = vpop.f32.mrb[82].mxu0 }
 0x6d1   : > { %v5365_v20 = vpop.f32.mrb[83].mxu0 }
 0x6d6   : > { %v2962_v7 = vpop.f32.mrb[84].mxu0 }
 0x6d7   : > { %v5376_v30 = vpop.f32.mrb[85].mxu0 }
 0x6d8   : > { %v2965_v46 = vpop.f32.mrb[86].mxu0 }
 0x6d9   : > { %v5377_v34 = vpop.f32.mrb[87].mxu0 }
 0x6da   : > { %v2863_v34 = vadd.f32 %v6504_v24, %v2862_v6 }
 0x6e7   : > { %v6513_v52 = vpop.f32.mrb[76].mxu1 }
 0x6e8   : > { %v5334_v33 = vpop.f32.mrb[77].mxu1 }
 0x6e9   : > { %v2615_v4 = vpop.f32.mrb[78].mxu1 }
 0x6ea   : > { %v5335_v9 = vpop.f32.mrb[79].mxu1  ;;  %v6523_v4 = vadd.f32 %v6504_v24, %v2962_v7 }
 0x6eb   : > { %v3030_v9 = vsel %vm880_vm2, %v2863_v34, -inf }
 0x6ef   : > { %v2712_v58 = vpop.f32.mrb[80].mxu1 }
 0x6f0   : > { %v2713_v40 = vadd.f32 %v6504_v24, %v2712_v58  ;;  %v5346_v1 = vpop.f32.mrb[81].mxu1 }
 0x6f1   : > { %v2715_v37 = vpop.f32.mrb[82].mxu1 }
 0x6f2   : > { %v5347_v28 = vpop.f32.mrb[83].mxu1  ;;  %v3021_v3 = vsel %vm880_vm2, %v2713_v40, -inf }
 0x6f3   : > { %3022 = vmax.xlane.f32.xlu1 %v3021_v3 }
 0x6f7   : > { %v2812_v59 = vpop.f32.mrb[84].mxu1 }
 0x6f8   : > { %v2813_v20 = vadd.f32 %v6504_v24, %v2812_v59  ;;  %v5358_v30 = vpop.f32.mrb[85].mxu1  ;;  %v3036_v59 = vsel %vm880_vm2, %v6523_v4, -inf }
 0x6f9   : > { %v2815_v46 = vpop.f32.mrb[86].mxu1 }
 0x6fa   : > { %v5359_v32 = vpop.f32.mrb[87].mxu1  ;;  %v3027_v33 = vsel %vm880_vm2, %v2813_v20, -inf }
 0x6fb   : > { %3028 = vmax.xlane.f32.xlu0 %v3027_v33 }
 0x6ff   : > { %3031 = vmax.xlane.f32.xlu0 %v3030_v9  ;;  %v2912_v58 = vpop.f32.mrb[88].mxu1 }
 0x700   : > { %v2913_v1 = vadd.f32 %v6504_v24, %v2912_v58  ;;  %v5370_v37 = vpop.f32.mrb[89].mxu1 }
 0x701   : > { %v2915_v28 = vpop.f32.mrb[90].mxu1 }
 0x702   : > { %v5371_v3 = vpop.f32.mrb[91].mxu1  ;;  %v3033_v6 = vsel %vm880_vm2, %v2913_v1, -inf }
 0x703   : > { %3037 = vmax.xlane.f32.xlu0 %v3036_v59  ;;  %3034 = vmax.xlane.f32.xlu1 %v3033_v6 }
 0x707   : > { %v3012_v32 = vpop.f32.mrb[92].mxu1 }
 0x708   : > { %v5382_v30 = vpop.f32.mrb[93].mxu1  ;;  %v6535_v33 = vadd.f32 %v6504_v24, %v3012_v32 }
 0x709   : > { %v3015_v7 = vpop.f32.mrb[94].mxu1 }
 0x70a   : > { %v5383_v46 = vpop.f32.mrb[95].mxu1  ;;  %v3039_v9 = vsel %vm880_vm2, %v6535_v33, -inf }
 0x714   : > { %3354 = vrot.lane.b32.xlu1 %v6188_v23, %s5780_s22 }
 0x719   : > { %3306 = vrot.lane.b32.xlu0 %v6162_v53, %s5780_s22 }
 0x738   : > { %3040 = vmax.xlane.f32.xlu1 %v3039_v9  ;;  %v3211_v9 = vpop.permute.xlu1 %3210 }
 0x74f   : > { %v3020_v58 = vpop.xlane.xlu0 %3019 }
 0x750   : > { %v3042_v37 = vsub.f32 %v6507_v27, %v3020_v58  ;;  %v6548_v27 = vpop.permute.xlu1 %3258 }
 0x752   : > { %v3050_v28 = vmul.f32 1.442695, %v3042_v37 }
 0x754   : > { %5704 = vpow2.f32 %v3050_v28 }
 0x757   : > { %v3026_v3 = vpop.xlane.xlu0 %3025 }
 0x758   : > { %v3044_v59 = vsub.f32 %v2763_v35, %v3026_v3 }
 0x75a   : > { %v3054_v6 = vmul.f32 1.442695, %v3044_v59 }
 0x75c   : > { %5706 = vpow2.f32 %v3054_v6 }
 0x75e   : > { %v6540_v30 = vpop.eup %5704 }
 0x75f   : > { %v3066_v7 = vsel %vm880_vm2, %v6540_v30, 0.0 }
 0x760   : > { %3067 = vadd.xlane.f32.xlu0 %v3066_v7 }
 0x766   : > { %v6544_v32 = vpop.eup %5706 }
 0x767   : > { %v3072_v46 = vsel %vm880_vm2, %v6544_v32, 0.0 }
 0x768   : > { %3073 = vadd.xlane.f32.xlu0 %v3072_v46 }
 0x780   : > { %v3023_v58 = vpop.xlane.xlu1 %3022 }
 0x781   : > { %v3043_v37 = vsub.f32 %v2713_v40, %v3023_v58 }
 0x783   : > { %v3052_v35 = vmul.f32 1.442695, %v3043_v37 }
 0x785   : > { %5708 = vpow2.f32 %v3052_v35 }
 0x788   : > { %v3029_v28 = vpop.xlane.xlu0 %3028 }
 0x789   : > { %v3045_v3 = vsub.f32 %v2813_v20, %v3029_v28 }
 0x78b   : > { %v3056_v59 = vmul.f32 1.442695, %v3045_v3 }
 0x78c   : > { %v3032_v6 = vpop.xlane.xlu0 %3031 }
 0x78d   : > { %5710 = vpow2.f32 %v3056_v59  ;;  %v3046_v49 = vsub.f32 %v2863_v34, %v3032_v6 }
 0x78f   : > { %v6550_v7 = vpop.eup %5708  ;;  %v3058_v25 = vmul.f32 1.442695, %v3046_v49 }
 0x790   : > { %v3069_v51 = vsel %vm880_vm2, %v6550_v7, 0.0  ;;  %v3035_v49 = vpop.xlane.xlu1 %3034 }
 0x791   : > { %5712 = vpow2.f32 %v3058_v25  ;;  %3070 = vadd.xlane.f32.xlu1 %v3069_v51  ;;  %v3047_v51 = vsub.f32 %v2913_v1, %v3035_v49  ;;  %v3038_v25 = vpop.xlane.xlu0 %3037 }
 0x792   : > { %v3048_v34 = vsub.f32 %v6523_v4, %v3038_v25 }
 0x793   : > { %v3060_v37 = vmul.f32 1.442695, %v3047_v51 }
 0x794   : > { %v3062_v35 = vmul.f32 1.442695, %v3048_v34  ;;  %v3355_v4 = vpop.permute.xlu1 %3354 }
 0x795   : > { %5714 = vpow2.f32 %v3060_v37  ;;  %v3307_v1 = vpop.permute.xlu0 %3306  ;;  %v3360_v37 = vsel %vm1348_vm3, %v3355_v4, 0 }
 0x796   : > { %5716 = vpow2.f32 %v3062_v35 }
 0x797   : > { %v6554_v46 = vpop.eup %5710 }
 0x798   : > { %v3075_v40 = vsel %vm880_vm2, %v6554_v46, 0.0 }
 0x799   : > { %3076 = vadd.xlane.f32.xlu1 %v3075_v40 }
 0x79b   : > { %v6558_v58 = vpop.eup %5712 }
 0x79c   : > { %v3078_v20 = vsel %vm880_vm2, %v6558_v58, 0.0 }
 0x79d   : > { %3079 = vadd.xlane.f32.xlu0 %v3078_v20 }
 0x79f   : > { %v6567_v28 = vpop.eup %5714 }
 0x7a0   : > { %v3081_v3 = vsel %vm880_vm2, %v6567_v28, 0.0  ;;  %v6571_v59 = vpop.eup %5716 }
 0x7a1   : > { %v3084_v6 = vsel %vm880_vm2, %v6571_v59, 0.0 }
 0x7aa   : > { %3450 = vrot.lane.b32.xlu1 %v6220_v14, %s5780_s22 }
 0x7b3   : > { %3402 = vrot.lane.b32.xlu0 %v6183_v39, %s5780_s22  ;;  %s6928_s22 = scalar_lea.vmem %s6961_s12, %s4849_s16 }
 0x7c5   : > { %v3041_v40 = vpop.xlane.xlu1 %3040 }
 0x7c6   : > { %v3049_v20 = vsub.f32 %v6535_v33, %v3041_v40  ;;  %v3216_v33 = vsel %vm1348_vm3, %v3211_v9, 0  ;;  %v3312_v9 = vsel %vm1348_vm3, %v3307_v1, 0 }
 0x7c8   : > { %v3064_v51 = vmul.f32 1.442695, %v3049_v20 }
 0x7ce   : > { %3082 = vadd.xlane.f32.xlu1 %v3081_v3 }
 0x7d2   : > { %3085 = vadd.xlane.f32.xlu0 %v3084_v6 }
 0x7df   : > { %3550 = vrot.lane.b32.xlu1 %v5937_v47, %s5781_s26 }
 0x7e8   : > { %3500 = vrot.lane.b32.xlu0 %v5926_v38, %s5781_s26 }
 0x7ec   : > { %3498 = vrot.lane.b32.xlu0 %v5939_v48, %s5781_s26 }
 0x7ed   : > { %v3068_v49 = vpop.xlane.xlu0 %3067 }
 0x7ee   : > { %5718 = vrcp.f32 %v3068_v49 }
 0x7ef   : > { %5720 = vpow2.f32 %v3064_v51 }
 0x7f0   : > { %3600 = vrot.lane.b32.xlu0 %v5924_v36, %s5781_s26 }
 0x7f4   : > { %3598 = vrot.lane.b32.xlu0 %v5935_v45, %s5781_s26 }
 0x7f5   : > { %v3074_v47 = vpop.xlane.xlu0 %3073 }
 0x7f6   : > { %5722 = vrcp.f32 %v3074_v47 }
 0x7f8   : > { %v5719_v38 = vpop.eup %5718  ;;  %3700 = vrot.lane.b32.xlu0 %v5944_v54, %s5781_s26 }
 0x7f9   : > { %v3098_v48 = vmul.f32 %v5719_v38, %v6540_v30  ;;  %v6595_v36 = vpop.eup %5720 }
 0x7fb   : > { %v3106_v25 = vpack.c.bf16 %v3098_v48, %v3098_v48 }
 0x7fc   : > { %3698 = vrot.lane.b32.xlu0 %v5967_v0, %s5781_s26  ;;  %v3087_v0 = vsel %vm880_vm2, %v6595_v36, 0.0 }
 0x7fd   : > { %5387 = vmatmul.mubr.msk.bf16.vlgmr.msra.gmra.mrb[88].mxu0 %vm880_vm2, %v3106_v25 }
 0x7fe   : > { %5397 = vmatpush3.bf16.msra.mxu0 %v3216_v33  ;;  %5398 = vmatprep.mubr.msk.bf16.mxu0 %vm5778_vm1, %v5777_v18 }
 0x7ff   : > { %5408 = vmatprep.subr.bf16.mxu0 %v5777_v18 }
 0x800   : > { %v5723_v45 = vpop.eup %5722  ;;  %3800 = vrot.lane.b32.xlu0 %v5958_v60, %s5781_s26 }
 0x801   : > { %v3100_v54 = vmul.f32 %v5723_v45, %v6544_v32 }
 0x803   : > { %3088 = vadd.xlane.f32.xlu1 %v3087_v0  ;;  %v3108_v30 = vpack.c.bf16 %v3100_v54, %v3100_v54 }
 0x804   : > { %3798 = vrot.lane.b32.xlu0 %v5991_v10, %s5781_s26 }
 0x805   : > { %5399 = vmatmul.mubr.msk.bf16.vlgmr.msra.gmra.mrb[92].mxu0 %vm880_vm2, %v3108_v30 }
 0x806   : > { %5409 = vmatpush3.bf16.msra.mxu0 %v3312_v9  ;;  %5410 = vmatprep.mubr.msk.bf16.mxu0 %vm5778_vm1, %v5777_v18 }
 0x807   : > { %5420 = vmatprep.subr.bf16.mxu0 %v5777_v18 }
 0x814   : > { %3548 = vrot.lane.b32.xlu1 %v5970_v2, %s5781_s26 }
 0x818   : > { %3650 = vrot.lane.b32.xlu1 %v5964_v62, %s5781_s26 }
 0x81c   : > { %3648 = vrot.lane.b32.xlu1 %v5993_v11, %s5781_s26 }
 0x81e   : > { %v3071_v60 = vpop.xlane.xlu1 %3070 }
 0x81f   : > { %5724 = vrcp.f32 %v3071_v60 }
 0x820   : > { %3750 = vrot.lane.b32.xlu1 %v5981_v8, %s5781_s26  ;;  %v3264_v8 = vsel %vm1348_vm3, %v6548_v27, 0 }
 0x824   : > { %3748 = vrot.lane.b32.xlu1 %v6011_v17, %s5781_s26 }
 0x826   : > { %v3077_v10 = vpop.xlane.xlu1 %3076 }
 0x827   : > { %5726 = vrcp.f32 %v3077_v10 }
 0x828   : > { %3850 = vrot.lane.b32.xlu1 %v6004_v15, %s5781_s26 }
 0x829   : > { %v5725_v2 = vpop.eup %5724 }
 0x82a   : > { %v3099_v32 = vmul.f32 %v5725_v2, %v6550_v7  ;;  %v3080_v62 = vpop.xlane.xlu0 %3079 }
 0x82b   : > { %5728 = vrcp.f32 %v3080_v62 }
 0x82c   : > { %3848 = vrot.lane.b32.xlu1 %v6020_v22, %s5781_s26  ;;  %v3107_v11 = vpack.c.bf16 %v3099_v32, %v3099_v32 }
 0x82e   : > { %5393 = vmatmul.mubr.msk.bf16.vlgmr.msra.gmra.mrb[96].mxu1 %vm880_vm2, %v3107_v11  ;;  %v3403_v27 = vpop.permute.xlu0 %3402 }
 0x82f   : > { %5403 = vmatpush3.bf16.msra.mxu1 %v3264_v8  ;;  %5404 = vmatprep.mubr.msk.bf16.mxu1 %vm5778_vm1, %v5777_v18  ;;  %v3408_v3 = vsel %vm1348_vm3, %v3403_v27, 0 }
 0x830   : > { %5414 = vmatprep.subr.bf16.mxu1 %v5777_v18 }
 0x831   : > { %v5727_v15 = vpop.eup %5726 }
 0x832   : > { %v3101_v17 = vmul.f32 %v5727_v15, %v6554_v46  ;;  %v3451_v46 = vpop.permute.xlu1 %3450 }
 0x833   : > { %v3456_v47 = vsel %vm1348_vm3, %v3451_v46, 0 }
 0x834   : > { %v3109_v7 = vpack.c.bf16 %v3101_v17, %v3101_v17 }
 0x835   : > { %v5729_v34 = vpop.eup %5728 }
 0x836   : > { %v3102_v22 = vmul.f32 %v5729_v34, %v6558_v58  ;;  %5405 = vmatmul.mubr.msk.bf16.vlgmr.msra.gmra.mrb[100].mxu1 %vm880_vm2, %v3109_v7 }
 0x837   : > { %5415 = vmatpush3.bf16.msra.mxu1 %v3360_v37  ;;  %5416 = vmatprep.mubr.msk.bf16.mxu1 %vm5778_vm1, %v5777_v18 }
 0x838   : > { %v3110_v35 = vpack.c.bf16 %v3102_v22, %v3102_v22  ;;  %5426 = vmatprep.subr.bf16.mxu1 %v5777_v18 }
 0x83a   : > { %5411 = vmatmul.mubr.msk.bf16.vlgmr.msra.gmra.mrb[96].mxu0 %vm880_vm2, %v3110_v35 }
 0x83b   : > { %5421 = vmatpush3.bf16.msra.mxu0 %v3408_v3  ;;  %5422 = vmatprep.mubr.msk.bf16.mxu0 %vm5778_vm1, %v5777_v18 }
 0x83c   : > { %5432 = vmatprep.subr.bf16.mxu0 %v5777_v18 }
 0x85b   : > { %v3083_v58 = vpop.xlane.xlu1 %3082 }
 0x85c   : > { %5730 = vrcp.f32 %v3083_v58 }
 0x85f   : > { %v3086_v6 = vpop.xlane.xlu0 %3085  ;;  %v3551_v60 = vpop.permute.xlu1 %3550 }
 0x860   : > { %5732 = vrcp.f32 %v3086_v6  ;;  %v3556_v17 = vsel %vm880_vm2, %v3551_v60, 0 }
 0x863   : > { %v3501_v4 = vpop.permute.xlu0 %3500 }
 0x864   : > { %v3506_v33 = vsel %vm880_vm2, %v3501_v4, 0 }
 0x866   : > { %v5731_v1 = vpop.eup %5730 }
 0x867   : > { %v3103_v40 = vmul.f32 %v5731_v1, %v6567_v28  ;;  %v3499_v20 = vpop.permute.xlu0 %3498 }
 0x869   : > { %v3111_v49 = vpack.c.bf16 %v3103_v40, %v3103_v40 }
 0x86a   : > { %v5733_v51 = vpop.eup %5732 }
 0x86b   : > { %v3104_v38 = vmul.f32 %v5733_v51, %v6571_v59  ;;  %5417 = vmatmul.mubr.msk.bf16.vlgmr.msra.gmra.mrb[104].mxu1 %vm880_vm2, %v3111_v49  ;;  %v3601_v48 = vpop.permute.xlu0 %3600 }
 0x86c   : > { %5427 = vmatpush3.bf16.msra.mxu1 %v3456_v47  ;;  %5428 = vmatprep.mubr.msk.bf16.mxu1 %vm5778_vm1, %v5777_v18  ;;  %v3606_v59 = vsel %vm880_vm2, %v3601_v48, 0 }
 0x86d   : > { %v3112_v25 = vpack.c.bf16 %v3104_v38, %v3104_v38  ;;  %5438 = vmatprep.subr.bf16.mxu1 %v5777_v18 }
 0x86f   : > { %5423 = vmatmul.mubr.msk.bf16.vlgmr.msra.gmra.mrb[100].mxu0 %vm880_vm2, %v3112_v25  ;;  %v3599_v28 = vpop.permute.xlu0 %3598 }
 0x870   : > { %5433 = vmatpush3.bf16.xpose.msra.mxu0 %v3506_v33  ;;  %5434 = vmatprep.mubr.msk.bf16.mxu0 %vm5778_vm1, %v5777_v18 }
 0x871   : > { %5444 = vmatprep.subr.bf16.mxu0 %v5777_v18 }
 0x873   : > { %v3701_v45 = vpop.permute.xlu0 %3700 }
 0x874   : > { %v3706_v0 = vsel %vm880_vm2, %v3701_v45, 0 }
 0x877   : > { %5435 = vmatmul.mubr.msk.bf16.vlgmr.msra.gmra.mrb[104].mxu0 %vm880_vm2, %v3499_v20  ;;  %v3699_v54 = vpop.permute.xlu0 %3698 }
 0x878   : > { %5445 = vmatpush3.bf16.xpose.msra.mxu0 %v3606_v59  ;;  %5446 = vmatprep.mubr.msk.bf16.mxu0 %vm5778_vm1, %v5777_v18 }
 0x879   : > { %5456 = vmatprep.subr.bf16.mxu0 %v5777_v18 }
 0x87b   : > { %v3801_v30 = vpop.permute.xlu0 %3800 }
 0x87c   : > { %v3806_v9 = vsel %vm880_vm2, %v3801_v30, 0 }
 0x87f   : > { %5447 = vmatmul.mubr.msk.bf16.vlgmr.msra.gmra.mrb[108].mxu0 %vm880_vm2, %v3599_v28  ;;  %v3799_v10 = vpop.permute.xlu0 %3798 }
 0x880   : > { %5457 = vmatpush3.bf16.xpose.msra.mxu0 %v3706_v0  ;;  %5458 = vmatprep.mubr.msk.bf16.mxu0 %vm5778_vm1, %v5777_v18 }
 0x881   : > { %5468 = vmatprep.subr.bf16.mxu0 %v5777_v18 }
 0x887   : > { %5459 = vmatmul.mubr.msk.bf16.vlgmr.msra.gmra.mrb[112].mxu0 %vm880_vm2, %v3699_v54 }
 0x888   : > { %5469 = vmatpush3.bf16.xpose.msra.mxu0 %v3806_v9  ;;  %5470 = vmatprep.mubr.msk.bf16.mxu0 %vm5778_vm1, %v5777_v18 }
 0x889   : > { %5480 = vmatprep.subr.bf16.mxu0 %v5777_v18 }
 0x88f   : > { %5471 = vmatmul.mubr.msk.bf16.vlgmr.msra.gmra.mrb[116].mxu0 %vm880_vm2, %v3799_v10 }
 0x890   : > { %v3089_v2 = vpop.xlane.xlu1 %3088  ;;  %5482 = vmatprep.mubr.msk.bf16.mxu0 %vm5778_vm1, %v5777_v18 }
 0x891   : > { %5734 = vrcp.f32 %v3089_v2 }
 0x894   : > { %v3549_v32 = vpop.permute.xlu1 %3548 }
 0x898   : > { %v3651_v8 = vpop.permute.xlu1 %3650 }
 0x899   : > { %v3656_v34 = vsel %vm880_vm2, %v3651_v8, 0 }
 0x89b   : > { %v5735_v62 = vpop.eup %5734 }
 0x89c   : > { %v3105_v11 = vmul.f32 %v5735_v62, %v6595_v36  ;;  %v3649_v7 = vpop.permute.xlu1 %3648 }
 0x89e   : > { %v3113_v15 = vpack.c.bf16 %v3105_v11, %v3105_v11 }
 0x8a0   : > { %5429 = vmatmul.mubr.msk.bf16.vlgmr.msra.gmra.mrb[108].mxu1 %vm880_vm2, %v3113_v15  ;;  %v3751_v37 = vpop.permute.xlu1 %3750 }
 0x8a1   : > { %5439 = vmatpush3.bf16.xpose.msra.mxu1 %v3556_v17  ;;  %5440 = vmatprep.mubr.msk.bf16.mxu1 %vm5778_vm1, %v5777_v18  ;;  %v3756_v22 = vsel %vm880_vm2, %v3751_v37, 0 }
 0x8a2   : > { %5450 = vmatprep.subr.bf16.mxu1 %v5777_v18 }
 0x8a4   : > { %v3749_v36 = vpop.permute.xlu1 %3748 }
 0x8a8   : > { %5441 = vmatmul.mubr.msk.bf16.vlgmr.msra.gmra.mrb[112].mxu1 %vm880_vm2, %v3549_v32  ;;  %v3851_v27 = vpop.permute.xlu1 %3850 }
 0x8a9   : > { %5451 = vmatpush3.bf16.xpose.msra.mxu1 %v3656_v34  ;;  %5452 = vmatprep.mubr.msk.bf16.mxu1 %vm5778_vm1, %v5777_v18  ;;  %v3856_v35 = vsel %vm880_vm2, %v3851_v27, 0 }
 0x8aa   : > { %5462 = vmatprep.subr.bf16.mxu1 %v5777_v18 }
 0x8ac   : > { %v3849_v3 = vpop.permute.xlu1 %3848 }
 0x8b0   : > { %5453 = vmatmul.mubr.msk.bf16.vlgmr.msra.gmra.mrb[116].mxu1 %vm880_vm2, %v3649_v7 }
 0x8b1   : > { %5463 = vmatpush3.bf16.xpose.msra.mxu1 %v3756_v22  ;;  %5464 = vmatprep.mubr.msk.bf16.mxu1 %vm5778_vm1, %v5777_v18 }
 0x8b2   : > { %5474 = vmatprep.subr.bf16.mxu1 %v5777_v18 }
 0x8b8   : > { %5465 = vmatmul.mubr.msk.bf16.vlgmr.msra.gmra.mrb[120].mxu1 %vm880_vm2, %v3749_v36 }
 0x8b9   : > { %5475 = vmatpush3.bf16.xpose.msra.mxu1 %v3856_v35  ;;  %5476 = vmatprep.mubr.msk.bf16.mxu1 %vm5778_vm1, %v5777_v18 }
 0x8ba   : > { %5486 = vmatprep.subr.bf16.mxu1 %v5777_v18 }
 0x8c0   : > { %5477 = vmatmul.mubr.msk.bf16.vlgmr.msra.gmra.mrb[124].mxu1 %vm880_vm2, %v3849_v3 }
 0x8c1   : > { %5488 = vmatprep.mubr.msk.bf16.mxu1 %vm5778_vm1, %v5777_v18 }
 0x8d0   : > { %v6697_v46 = vpop.f32.mrb[88].mxu0 }
 0x8d1   : > { %v5388_v58 = vpop.f32.mrb[89].mxu0 }
 0x8d2   : > { %v3159_v6 = vpop.f32.mrb[90].mxu0 }
 0x8d3   : > { %v5389_v4 = vpop.f32.mrb[91].mxu0 }
 0x8d8   : > { %v6699_v1 = vpop.f32.mrb[92].mxu0 }
 0x8d9   : > { %v5400_v40 = vpop.f32.mrb[93].mxu0 }
 0x8da   : > { %v3255_v20 = vpop.f32.mrb[94].mxu0 }
 0x8db   : > { %v5401_v49 = vpop.f32.mrb[95].mxu0 }
 0x901   : > { %v6701_v51 = vpop.f32.mrb[96].mxu1 }
 0x902   : > { %v5570_v47 = vpack.i.bf16 %v6701_v51, %v6697_v46  ;;  %v5394_v38 = vpop.f32.mrb[97].mxu1 }
 0x903   : > { %v3207_v48 = vpop.f32.mrb[98].mxu1 }
 0x904   : > { %v5395_v25 = vpop.f32.mrb[99].mxu1 }
 0x909   : > { %v6705_v33 = vpop.f32.mrb[100].mxu1 }
 0x90a   : > { %v5575_v28 = vpack.i.bf16 %v6705_v33, %v6699_v1  ;;  %v5406_v59 = vpop.f32.mrb[101].mxu1 }
 0x90b   : > { %v3303_v45 = vpop.f32.mrb[102].mxu1 }
 0x90c   : > { %v5407_v54 = vpop.f32.mrb[103].mxu1 }
 0x90d   : > { %v6709_v0 = vpop.f32.mrb[96].mxu0 }
 0x90e   : > { %v5412_v30 = vpop.f32.mrb[97].mxu0 }
 0x90f   : > { %v3351_v9 = vpop.f32.mrb[98].mxu0 }
 0x910   : > { %v5413_v60 = vpop.f32.mrb[99].mxu0 }
 0x93e   : > { %v6711_v10 = vpop.f32.mrb[104].mxu1 }
 0x93f   : > { %v5595_v2 = vpack.i.bf16 %v6711_v10, %v6709_v0  ;;  %v5418_v32 = vpop.f32.mrb[105].mxu1 }
 0x940   : > { %v3399_v62 = vpop.f32.mrb[106].mxu1 }
 0x941   : > { %v5419_v11 = vpop.f32.mrb[107].mxu1 }
 0x942   : > { %v6715_v8 = vpop.f32.mrb[100].mxu0 }
 0x943   : > { %v5424_v15 = vpop.f32.mrb[101].mxu0 }
 0x944   : > { %v3447_v17 = vpop.f32.mrb[102].mxu0 }
 0x945   : > { %v5425_v7 = vpop.f32.mrb[103].mxu0 }
 0x94a   : > { %v3542_v34 = vpop.f32.mrb[104].mxu0 }
 0x94b   : > { %v6718_v37 = vadd.f32 %v6504_v24, %v3542_v34  ;;  %v5436_v36 = vpop.f32.mrb[105].mxu0 }
 0x94c   : > { %v3545_v22 = vpop.f32.mrb[106].mxu0 }
 0x94d   : > { %v5437_v27 = vpop.f32.mrb[107].mxu0  ;;  %v3898_v35 = vsel %vm880_vm2, %v6718_v37, -inf }
 0x94e   : > { %3899 = vmax.xlane.f32.xlu0 %v3898_v35 }
 0x952   : > { %v3642_v3 = vpop.f32.mrb[108].mxu0 }
 0x953   : > { %v6723_v58 = vadd.f32 %v6504_v24, %v3642_v3  ;;  %v5448_v6 = vpop.f32.mrb[109].mxu0 }
 0x954   : > { %v3645_v4 = vpop.f32.mrb[110].mxu0 }
 0x955   : > { %v5449_v40 = vpop.f32.mrb[111].mxu0  ;;  %v3904_v20 = vsel %vm880_vm2, %v6723_v58, -inf }
 0x956   : > { %3905 = vmax.xlane.f32.xlu0 %v3904_v20 }
 0x95a   : > { %v3742_v49 = vpop.f32.mrb[112].mxu0 }
 0x95b   : > { %v5460_v38 = vpop.f32.mrb[113].mxu0  ;;  %v3743_v4 = vadd.f32 %v6504_v24, %v3742_v49 }
 0x95c   : > { %v3745_v48 = vpop.f32.mrb[114].mxu0 }
 0x95d   : > { %v5461_v25 = vpop.f32.mrb[115].mxu0  ;;  %v3910_v48 = vsel %vm880_vm2, %v3743_v4, -inf }
 0x962   : > { %v3842_v59 = vpop.f32.mrb[116].mxu0 }
 0x963   : > { %v5472_v45 = vpop.f32.mrb[117].mxu0  ;;  %v3843_v38 = vadd.f32 %v6504_v24, %v3842_v59 }
 0x964   : > { %v3845_v54 = vpop.f32.mrb[118].mxu0 }
 0x965   : > { %v5473_v30 = vpop.f32.mrb[119].mxu0 }
 0x973   : > { %v6727_v9 = vpop.f32.mrb[108].mxu1 }
 0x974   : > { %v5605_v60 = vpack.i.bf16 %v6727_v9, %v6715_v8  ;;  %v5430_v32 = vpop.f32.mrb[109].mxu1 }
 0x975   : > { %v3495_v62 = vpop.f32.mrb[110].mxu1 }
 0x976   : > { %v5431_v11 = vpop.f32.mrb[111].mxu1  ;;  %v3916_v62 = vsel %vm880_vm2, %v3843_v38, -inf }
 0x97b   : > { %v3592_v15 = vpop.f32.mrb[112].mxu1 }
 0x97c   : > { %v3593_v17 = vadd.f32 %v6504_v24, %v3592_v15  ;;  %v5442_v7 = vpop.f32.mrb[113].mxu1 }
 0x97d   : > { %v3595_v34 = vpop.f32.mrb[114].mxu1 }
 0x97e   : > { %v5443_v36 = vpop.f32.mrb[115].mxu1  ;;  %v3901_v22 = vsel %vm880_vm2, %v3593_v17, -inf }
 0x97f   : > { %3902 = vmax.xlane.f32.xlu1 %v3901_v22 }
 0x983   : > { %v3692_v27 = vpop.f32.mrb[116].mxu1 }
 0x984   : > { %v6734_v35 = vadd.f32 %v6504_v24, %v3692_v27  ;;  %v5454_v3 = vpop.f32.mrb[117].mxu1 }
 0x985   : > { %v3695_v6 = vpop.f32.mrb[118].mxu1 }
 0x986   : > { %v5455_v40 = vpop.f32.mrb[119].mxu1  ;;  %v3907_v20 = vsel %vm880_vm2, %v6734_v35, -inf }
 0x987   : > { %3908 = vmax.xlane.f32.xlu0 %v3907_v20 }
 0x98b   : > { %3911 = vmax.xlane.f32.xlu0 %v3910_v48  ;;  %v3792_v25 = vpop.f32.mrb[120].mxu1 }
 0x98c   : > { %v6742_v45 = vadd.f32 %v6504_v24, %v3792_v25  ;;  %v5466_v54 = vpop.f32.mrb[121].mxu1 }
 0x98d   : > { %v3795_v30 = vpop.f32.mrb[122].mxu1 }
 0x98e   : > { %v5467_v32 = vpop.f32.mrb[123].mxu1  ;;  %v3913_v49 = vsel %vm880_vm2, %v6742_v45, -inf }
 0x98f   : > { %3917 = vmax.xlane.f32.xlu0 %v3916_v62  ;;  %3914 = vmax.xlane.f32.xlu1 %v3913_v49 }
 0x993   : > { %v3892_v11 = vpop.f32.mrb[124].mxu1 }
 0x994   : > { %v5478_v15 = vpop.f32.mrb[125].mxu1  ;;  %v6754_v34 = vadd.f32 %v6504_v24, %v3892_v11 }
 0x995   : > { %v3895_v59 = vpop.f32.mrb[126].mxu1 }
 0x996   : > { %v5479_v7 = vpop.f32.mrb[127].mxu1  ;;  %v3919_v36 = vsel %vm880_vm2, %v6754_v34, -inf }
 0x9a0   : > { %4042 = vrot.lane.b32.xlu1 %v6043_v42, %s5781_s26 }
 0x9a4   : > { %4090 = vrot.lane.b32.xlu1 %v6142_v13, %s5781_s26 }
 0x9a5   : > { %3994 = vrot.lane.b32.xlu0 %v6041_v41, %s5781_s26 }
 0x9c8   : > { %3920 = vmax.xlane.f32.xlu1 %v3919_v36 }
 0x9d9   : > { %4138 = vrot.lane.b32.xlu1 %v6158_v50, %s5781_s26 }
 0x9db   : > { %v3900_v22 = vpop.xlane.xlu0 %3899 }
 0x9dc   : > { %v3922_v27 = vsub.f32 %v6718_v37, %v3900_v22 }
 0x9de   : > { %v3930_v42 = vmul.f32 1.442695, %v3922_v27 }
 0x9e0   : > { %5736 = vpow2.f32 %v3930_v42 }
 0x9e3   : > { %v3906_v3 = vpop.xlane.xlu0 %3905 }
 0x9e4   : > { %v3924_v13 = vsub.f32 %v6723_v58, %v3906_v3 }
 0x9e6   : > { %v3934_v6 = vmul.f32 1.442695, %v3924_v13 }
 0x9e8   : > { %5738 = vpow2.f32 %v3934_v6 }
 0x9ea   : > { %v6762_v41 = vpop.eup %5736 }
 0x9eb   : > { %v3946_v24 = vsel %vm880_vm2, %v6762_v41, 0.0 }
 0x9ec   : > { %3947 = vadd.xlane.f32.xlu0 %v3946_v24  ;;  %v6962_v24 = vpack.i.bf16 %v6485_v31, %v6473_v29 }
 0x9f2   : > { %v6766_v40 = vpop.eup %5738 }
 0x9f3   : > { %v3952_v50 = vsel %vm880_vm2, %v6766_v40, 0.0 }
 0x9f4   : > { %3953 = vadd.xlane.f32.xlu0 %v3952_v50 }
 0xa0a   : > { %4186 = vrot.lane.b32.xlu0 %v6162_v53, %s5781_s26 }
 0xa0c   : > { %v3903_v37 = vpop.xlane.xlu1 %3902 }
 0xa0d   : > { %v3923_v20 = vsub.f32 %v3593_v17, %v3903_v37  ;;  %v6964_v37 = vpack.i.bf16 %v6489_v44, %v6480_v43 }
 0xa0f   : > { %v3932_v58 = vmul.f32 1.442695, %v3923_v20  ;;  %v6965_v20 = vpack.i.bf16 %v6513_v52, %v6499_v12 }
 0xa11   : > { %5740 = vpow2.f32 %v3932_v58 }
 0xa14   : > { %v3909_v48 = vpop.xlane.xlu0 %3908 }
 0xa15   : > { %v3925_v42 = vsub.f32 %v6734_v35, %v3909_v48  ;;  %v6963_v35 = vpack.i.bf16 %v6495_v57, %v6493_v5 }
 0xa17   : > { %v3936_v3 = vmul.f32 1.442695, %v3925_v42 }
 0xa18   : > { %v3912_v25 = vpop.xlane.xlu0 %3911 }
 0xa19   : > { %v3926_v54 = vsub.f32 %v3743_v4, %v3912_v25 }
 0xa1b   : > { %v6772_v30 = vpop.eup %5740  ;;  %v3938_v32 = vmul.f32 1.442695, %v3926_v54 }
 0xa1c   : > { %v3918_v62 = vpop.xlane.xlu0 %3917  ;;  %v3915_v49 = vpop.xlane.xlu1 %3914  ;;  %v3949_v11 = vsel %vm880_vm2, %v6772_v30, 0.0 }
 0xa1d   : > { %5742 = vpow2.f32 %v3938_v32  ;;  %v3928_v15 = vsub.f32 %v3843_v38, %v3918_v62  ;;  %3950 = vadd.xlane.f32.xlu1 %v3949_v11  ;;  %v3927_v13 = vsub.f32 %v6742_v45, %v3915_v49 }
 0xa1f   : > { %v3942_v59 = vmul.f32 1.442695, %v3928_v15  ;;  %v3940_v6 = vmul.f32 1.442695, %v3927_v13 }
 0xa20   : > { %v3995_v53 = vpop.permute.xlu0 %3994  ;;  %v4043_v7 = vpop.permute.xlu1 %4042 }
 0xa21   : > { %5744 = vpow2.f32 %v3942_v59  ;;  %v4000_v17 = vsel %vm1348_vm3, %v3995_v53, 0  ;;  %v4048_v36 = vsel %vm1348_vm3, %v4043_v7, 0 }
 0xa22   : > { %5481 = vmatpush3.bf16.msra.mxu0 %v4000_v17  ;;  %5487 = vmatpush3.bf16.msra.mxu1 %v4048_v36  ;;  %5746 = vpow2.f32 %v3936_v3 }
 0xa23   : > { %5492 = vmatprep.subr.bf16.mxu0 %v5777_v18  ;;  %5498 = vmatprep.subr.bf16.mxu1 %v5777_v18  ;;  %5748 = vpow2.f32 %v3940_v6 }
 0xa27   : > { %v6780_v4 = vpop.eup %5742 }
 0xa28   : > { %v3958_v38 = vsel %vm880_vm2, %v6780_v4, 0.0 }
 0xa29   : > { %3959 = vadd.xlane.f32.xlu0 %v3958_v38 }
 0xa2b   : > { %v6784_v22 = vpop.eup %5744 }
 0xa2c   : > { %v3964_v27 = vsel %vm880_vm2, %v6784_v22, 0.0 }
 0xa2d   : > { %3965 = vadd.xlane.f32.xlu0 %v3964_v27 }
 0xa2e   : > { %4234 = vrot.lane.b32.xlu1 %v6188_v23, %s5781_s26  ;;  %v6801_v23 = vpop.eup %5746 }
 0xa2f   : > { %v3955_v45 = vsel %vm880_vm2, %v6801_v23, 0.0  ;;  %v6808_v50 = vpop.eup %5748 }
 0xa30   : > { %v3961_v31 = vsel %vm880_vm2, %v6808_v50, 0.0 }
 0xa43   : > { %4282 = vrot.lane.b32.xlu0 %v6183_v39, %s5781_s26  ;;  %v4091_v39 = vpop.permute.xlu1 %4090 }
 0xa44   : > { %v4096_v25 = vsel %vm1348_vm3, %v4091_v39, 0 }
 0xa47   : > { %5561 = vrot.lane.b32.xlu0 %v6962_v24, %s5782_s27 }
 0xa4b   : > { %5571 = vrot.lane.b32.xlu0 %v5570_v47, %s5783_s28 }
 0xa4f   : > { %5581 = vrot.lane.b32.xlu0 %v6963_v35, %s5782_s27 }
 0xa52   : > { %3956 = vadd.xlane.f32.xlu1 %v3955_v45 }
 0xa55   : > { %v3921_v29 = vpop.xlane.xlu1 %3920 }
 0xa56   : > { %v3929_v46 = vsub.f32 %v6754_v34, %v3921_v29  ;;  %3962 = vadd.xlane.f32.xlu1 %v3961_v31 }
 0xa58   : > { %v3944_v51 = vmul.f32 1.442695, %v3929_v46 }
 0xa59   : > { %v4139_v33 = vpop.permute.xlu1 %4138 }
 0xa5a   : > { %5750 = vpow2.f32 %v3944_v51  ;;  %v4144_v62 = vsel %vm1348_vm3, %v4139_v33, 0 }
 0xa64   : > { %v6813_v47 = vpop.eup %5750 }
 0xa65   : > { %v3967_v5 = vsel %vm880_vm2, %v6813_v47, 0.0 }
 0xa66   : > { %3968 = vadd.xlane.f32.xlu1 %v3967_v5 }
 0xa77   : > { %4330 = vrot.lane.b32.xlu1 %v6220_v14, %s5781_s26 }
 0xa79   : > { %v3948_v57 = vpop.xlane.xlu0 %3947 }
 0xa7a   : > { %5752 = vrcp.f32 %v3948_v57 }
 0xa7b   : > { %5566 = vrot.lane.b32.xlu1 %v6964_v37, %s5782_s27 }
 0xa7f   : > { %5576 = vrot.lane.b32.xlu1 %v5575_v28, %s5783_s28 }
 0xa81   : > { %v3954_v34 = vpop.xlane.xlu0 %3953 }
 0xa82   : > { %5754 = vrcp.f32 %v3954_v34 }
 0xa83   : > { %5586 = vrot.lane.b32.xlu1 %v6965_v20, %s5782_s27 }
 0xa84   : > { %v5753_v58 = vpop.eup %5752 }
 0xa85   : > { %v3978_v14 = vmul.f32 %v5753_v58, %v6762_v41  ;;  %v4187_v1 = vpop.permute.xlu0 %4186 }
 0xa86   : > { %v4192_v52 = vsel %vm1348_vm3, %v4187_v1, 0 }
 0xa87   : > { %v3986_v48 = vpack.c.bf16 %v3978_v14, %v3978_v14  ;;  %v5638_v14 = vld [vmem:[%s6959_s10] sm:$0xff]  }
 0xa89   : > { %5483 = vmatmul.mubr.msk.bf16.vlgmr.msra.gmra.mrb[120].mxu0 %vm880_vm2, %v3986_v48 }
 0xa8a   : > { %5493 = vmatpush3.bf16.msra.mxu0 %v4096_v25  ;;  %5494 = vmatprep.mubr.msk.bf16.mxu0 %vm5778_vm1, %v5777_v18 }
 0xa8b   : > { %5504 = vmatprep.subr.bf16.mxu0 %v5777_v18 }
 0xa8c   : > { %v5755_v43 = vpop.eup %5754 }
 0xa8d   : > { %v3980_v44 = vmul.f32 %v5755_v43, %v6766_v40 }
 0xa8f   : > { %v3988_v12 = vpack.c.bf16 %v3980_v44, %v3980_v44 }
 0xa91   : > { %5495 = vmatmul.mubr.msk.bf16.vlgmr.msra.gmra.mrb[124].mxu0 %vm880_vm2, %v3988_v12 }
 0xa92   : > { %5505 = vmatpush3.bf16.msra.mxu0 %v4192_v52  ;;  %5506 = vmatprep.mubr.msk.bf16.mxu0 %vm5778_vm1, %v5777_v18 }
 0xa93   : > { %5516 = vmatprep.subr.bf16.mxu0 %v5777_v18 }
 0xaaa   : > { %v3951_v28 = vpop.xlane.xlu1 %3950 }
 0xaab   : > { %5756 = vrcp.f32 %v3951_v28 }
 0xaae   : > { %v4235_v38 = vpop.permute.xlu1 %4234 }
 0xaaf   : > { %v4240_v24 = vsel %vm1348_vm3, %v4235_v38, 0 }
 0xab5   : > { %v5757_v41 = vpop.eup %5756 }
 0xab6   : > { %v3979_v54 = vmul.f32 %v5757_v41, %v6772_v30  ;;  %v3960_v32 = vpop.xlane.xlu0 %3959 }
 0xab7   : > { %5758 = vrcp.f32 %v3960_v32  ;;  %v5639_v32 = vld [vmem:[%s6959_s10 + $0x8] sm:$0xff]  }
 0xab8   : > { %v3987_v40 = vpack.c.bf16 %v3979_v54, %v3979_v54 }
 0xaba   : > { %v3966_v49 = vpop.xlane.xlu0 %3965  ;;  %5489 = vmatmul.mubr.msk.bf16.vlgmr.msra.gmra.mrb[128].mxu1 %vm880_vm2, %v3987_v40 }
 0xabb   : > { %5760 = vrcp.f32 %v3966_v49  ;;  %5499 = vmatpush3.bf16.msra.mxu1 %v4144_v62  ;;  %5500 = vmatprep.mubr.msk.bf16.mxu1 %vm5778_vm1, %v5777_v18 }
 0xabc   : > { %5510 = vmatprep.subr.bf16.mxu1 %v5777_v18 }
 0xabe   : > { %v4283_v59 = vpop.permute.xlu0 %4282 }
 0xabf   : > { %v4288_v7 = vsel %vm1348_vm3, %v4283_v59, 0 }
 0xac1   : > { %v5759_v11 = vpop.eup %5758 }
 0xac2   : > { %v3982_v15 = vmul.f32 %v5759_v11, %v6780_v4 }
 0xac4   : > { %v3990_v30 = vpack.c.bf16 %v3982_v15, %v3982_v15 }
 0xac5   : > { %v5761_v53 = vpop.eup %5760 }
 0xac6   : > { %5507 = vmatmul.mubr.msk.bf16.vlgmr.msra.gmra.mrb[128].mxu0 %vm880_vm2, %v3990_v30  ;;  %v3984_v17 = vmul.f32 %v5761_v53, %v6784_v22 }
 0xac7   : > { %5517 = vmatpush3.bf16.msra.mxu0 %v4288_v7  ;;  %5518 = vmatprep.mubr.msk.bf16.mxu0 %vm5778_vm1, %v5777_v18 }
 0xac8   : > { %v3992_v36 = vpack.c.bf16 %v3984_v17, %v3984_v17  ;;  %5528 = vmatprep.subr.bf16.mxu0 %v5638_v14 }
 0xace   : > { %5519 = vmatmul.mubr.msk.bf16.vlgmr.msra.gmra.mrb[132].mxu0 %vm880_vm2, %v3992_v36 }
 0xacf   : > { %5529 = vmatpush3.bf16.msra.mxu0 %v5638_v14 }
 0xad0   : > { %5530 = vmatprep.subr.bf16.mxu0 %v5639_v32 }
 0xad3   : > { %5531 = vmatpush3.bf16.msra.mxu0 %v5639_v32 }
 0xadf   : > { %v3957_v27 = vpop.xlane.xlu1 %3956 }
 0xae0   : > { %5762 = vrcp.f32 %v3957_v27  ;;  %v5562_v27 = vpop.permute.xlu0 %5561 }
 0xae1   : > { %v5563_v8 = vunpack.i.l.bf16 %v5562_v27 }
 0xae3   : > { %v3963_v4 = vpop.xlane.xlu1 %3962 }
 0xae4   : > { %5764 = vrcp.f32 %v3963_v4  ;;  %v5572_v4 = vpop.permute.xlu0 %5571 }
 0xae5   : > { %v5574_v9 = vunpack.i.h.bf16 %v5572_v4 }
 0xaea   : > { %v5763_v42 = vpop.eup %5762 }
 0xaeb   : > { %v3981_v3 = vmul.f32 %v5763_v42, %v6801_v23  ;;  %v5582_v42 = vpop.permute.xlu0 %5581 }
 0xaed   : > { %v3989_v13 = vpack.c.bf16 %v3981_v3, %v3981_v3  ;;  %v5564_v3 = vunpack.i.h.bf16 %v5562_v27 }
 0xaee   : > { %v5765_v6 = vpop.eup %5764 }
 0xaef   : > { %5501 = vmatmul.mubr.msk.bf16.vlgmr.msra.gmra.mrb[132].mxu1 %vm880_vm2, %v3989_v13  ;;  %v3983_v22 = vmul.f32 %v5765_v6, %v6808_v50  ;;  %v4475_v6 = vsel %vm880_vm2, %v6272_v61, %v5564_v3 }
 0xaf0   : > { %5511 = vmatpush3.bf16.msra.mxu1 %v4240_v24  ;;  %5512 = vmatprep.mubr.msk.bf16.mxu1 %vm5778_vm1, %v5777_v18  ;;  %v4474_v24 = vsel %vm880_vm2, %v6270_v56, %v5563_v8 }
 0xaf1   : > { %5522 = vmatprep.subr.bf16.mxu1 %v5777_v18  ;;  %v3991_v39 = vpack.c.bf16 %v3983_v22, %v3983_v22 }
 0xaf3   : > { %v3969_v35 = vpop.xlane.xlu1 %3968 }
 0xaf4   : > { %5766 = vrcp.f32 %v3969_v35 }
 0xaf7   : > { %5513 = vmatmul.mubr.msk.bf16.vlgmr.msra.gmra.mrb[136].mxu1 %vm880_vm2, %v3991_v39  ;;  %v4331_v23 = vpop.permute.xlu1 %4330 }
 0xaf8   : > { %v4336_v45 = vsel %vm1348_vm3, %v4331_v23, 0  ;;  %5524 = vmatprep.mubr.msk.bf16.mxu1 %vm5778_vm1, %v5777_v18  ;;  %v4484_v23 = vsel %vm4482_vm4, %v4475_v6, %v5574_v9 }
 0xaf9   : > { %5523 = vmatpush3.bf16.msra.mxu1 %v4336_v45 }
 0xafe   : > { %v5767_v29 = vpop.eup %5766 }
 0xaff   : > { %v3985_v31 = vmul.f32 %v5767_v29, %v6813_v47 }
 0xb01   : > { %v3993_v46 = vpack.c.bf16 %v3985_v31, %v3985_v31 }
 0xb03   : > { %5525 = vmatmul.mubr.msk.bf16.vlgmr.msra.gmra.mrb[140].mxu1 %vm880_vm2, %v3993_v46  ;;  %v5567_v46 = vpop.permute.xlu1 %5566 }
 0xb04   : > { %v5569_v61 = vunpack.i.h.bf16 %v5567_v46 }
 0xb5c   : > { %v4036_v50 = vpop.f32.mrb[120].mxu0 }
 0xb5d   : > { %v5484_v51 = vpop.f32.mrb[121].mxu0 }
 0xb5e   : > { %v4039_v5 = vpop.f32.mrb[122].mxu0 }
 0xb5f   : > { %v5485_v57 = vpop.f32.mrb[123].mxu0  ;;  %v5568_v5 = vunpack.i.l.bf16 %v5567_v46 }
 0xb64   : > { %v4132_v37 = vpop.f32.mrb[124].mxu0 }
 0xb65   : > { %v5496_v34 = vpop.f32.mrb[125].mxu0 }
 0xb66   : > { %v4135_v20 = vpop.f32.mrb[126].mxu0  ;;  %v4477_v34 = vsel %vm880_vm2, %v6278_v19, %v5569_v61 }
 0xb67   : > { %v5497_v58 = vpop.f32.mrb[127].mxu0  ;;  %v4476_v20 = vsel %vm880_vm2, %v6274_v63, %v5568_v5 }
 0xb8d   : > { %v4084_v18 = vpop.f32.mrb[128].mxu1 }
 0xb8e   : > { %v5590_v48 = vpack.i.bf16 %v4084_v18, %v4036_v50  ;;  %v5490_v47 = vpop.f32.mrb[129].mxu1  ;;  %v5577_v50 = vpop.permute.xlu1 %5576 }
 0xb8f   : > { %v4087_v25 = vpop.f32.mrb[130].mxu1  ;;  %v5579_v57 = vunpack.i.h.bf16 %v5577_v50  ;;  %v5578_v56 = vunpack.i.l.bf16 %v5577_v50 }
 0xb90   : > { %5591 = vrot.lane.b32.xlu0 %v5590_v48, %s5784_s13  ;;  %v5491_v43 = vpop.f32.mrb[131].mxu1 }
 0xb91   : > { %v4485_v18 = vsel %vm4482_vm4, %v4476_v20, %v5578_v56  ;;  %v4486_v48 = vsel %vm4482_vm4, %v4477_v34, %v5579_v57 }
 0xb92   : > { %v5587_v51 = vpop.permute.xlu1 %5586 }
 0xb94   : > { %5596 = vrot.lane.b32.xlu0 %v5595_v2, %s5783_s28 }
 0xb99   : > { %v4228_v44 = vpop.f32.mrb[128].mxu0 }
 0xb9a   : > { %v5508_v1 = vpop.f32.mrb[129].mxu0 }
 0xb9b   : > { %v4231_v12 = vpop.f32.mrb[130].mxu0  ;;  %v5584_v1 = vunpack.i.h.bf16 %v5582_v42 }
 0xb9c   : > { %v5509_v52 = vpop.f32.mrb[131].mxu0  ;;  %v5583_v12 = vunpack.i.l.bf16 %v5582_v42  ;;  %v4597_v42 = vlaneseq }
 0xb9d   : > { %v4479_v63 = vsel %vm880_vm2, %v6290_v55, %v5584_v1 }
 0xb9e   : > { %v4598_v3 = vshrl.u32 %v4597_v42, 7 }
 0xba0   : > { %v4601_v8 = vadd.s32 24, %v4598_v3  ;;  %v4599_v9 = vadd.s32 8, %v4598_v3  ;;  %v4604_v57 = vadd.s32 48, %v4598_v3  ;;  %v4602_v56 = vadd.s32 32, %v4598_v3 }
 0xba1   : > { %v4324_v33 = vpop.f32.mrb[132].mxu0  ;;  %v4603_v34 = vadd.s32 40, %v4598_v3 }
 0xba2   : > { %v5520_v28 = vpop.f32.mrb[133].mxu0  ;;  %v4617_v6 = vand.u32 7, %v4599_v9  ;;  %v4652_v20 = vand.u32 7, %v4604_v57 }
 0xba3   : > { %v4327_v41 = vpop.f32.mrb[134].mxu0  ;;  %v4478_v28 = vsel %vm880_vm2, %v6276_v16, %v5583_v12 }
 0xba4   : > { %v5521_v54 = vpop.f32.mrb[135].mxu0  ;;  %vm4703_vm9 = vcmp.eq.s32.totalorder %v4617_v6, 0  ;;  %vm4708_vm10 = vcmp.eq.s32.totalorder %v4652_v20, 0 }
 0xbc2   : > { %v4180_v40 = vpop.f32.mrb[132].mxu1 }
 0xbc3   : > { %v5600_v62 = vpack.i.bf16 %v4180_v40, %v4132_v37  ;;  %v5502_v49 = vpop.f32.mrb[133].mxu1 }
 0xbc4   : > { %v4183_v11 = vpop.f32.mrb[134].mxu1 }
 0xbc5   : > { %5601 = vrot.lane.b32.xlu1 %v5600_v62, %s5784_s13  ;;  %v5503_v0 = vpop.f32.mrb[135].mxu1 }
 0xbc9   : > { %5606 = vrot.lane.b32.xlu1 %v5605_v60, %s5783_s28  ;;  %v5573_v60 = vunpack.i.l.bf16 %v5572_v4 }
 0xbca   : > { %v4276_v10 = vpop.f32.mrb[136].mxu1 }
 0xbcb   : > { %v5610_v2 = vpack.i.bf16 %v4276_v10, %v4228_v44  ;;  %v5514_v15 = vpop.f32.mrb[137].mxu1  ;;  %v4483_v39 = vsel %vm4482_vm4, %v4474_v24, %v5573_v60  ;;  %v5589_v10 = vunpack.i.h.bf16 %v5587_v51  ;;  %v4610_v60 = vand.u32 7, %v4598_v3  ;;  %v4953_v24 = vld [vmem:[%s6960_s11] ss:$0 sm:$0xff] }
 0xbcc   : > { %v4279_v59 = vpop.f32.mrb[138].mxu1 }
 0xbcd   : > { %5611 = vrot.lane.b32.xlu0 %v5610_v2, %s5784_s13  ;;  %v5515_v30 = vpop.f32.mrb[139].mxu1  ;;  %v5588_v2 = vunpack.i.l.bf16 %v5587_v51  ;;  %v4481_v16 = vsel %vm880_vm2, %v6294_v26, %v5589_v10  ;;  %v4600_v26 = vadd.s32 16, %v4598_v3  ;;  %vm4702_vm7 = vcmp.eq.s32.totalorder %v4610_v60, 0 }
 0xbcf   : > { %v4480_v30 = vsel %vm880_vm2, %v6280_v21, %v5588_v2  ;;  %v4624_v21 = vand.u32 7, %v4600_v26 }
 0xbd1   : > { %vm4704_vm6 = vcmp.eq.s32.totalorder %v4624_v21, 0 }
 0xbd6   : > { %v4372_v53 = vpop.f32.mrb[140].mxu1 }
 0xbd7   : > { %v5615_v7 = vpack.i.bf16 %v4372_v53, %v4324_v33  ;;  %v5526_v17 = vpop.f32.mrb[141].mxu1 }
 0xbd8   : > { %v4375_v36 = vpop.f32.mrb[142].mxu1 }
 0xbd9   : > { %5616 = vrot.lane.b32.xlu1 %v5615_v7, %s5784_s13  ;;  %v5527_v38 = vpop.f32.mrb[143].mxu1 }
 0xc02   : > { %v5592_v13 = vpop.permute.xlu0 %5591 }
 0xc03   : > { %v5594_v22 = vunpack.i.h.bf16 %v5592_v13  ;;  %v5593_v35 = vunpack.i.l.bf16 %v5592_v13  ;;  %v4631_v13 = vand.u32 7, %v4601_v8 }
 0xc05   : > { %v4493_v45 = vsel %vm4491_vm5, %v4484_v23, %v5594_v22  ;;  %v4492_v29 = vsel %vm4491_vm5, %v4483_v39, %v5593_v35  ;;  %vm4705_vm8 = vcmp.eq.s32.totalorder %v4631_v13, 0 }
 0xc06   : > { %v4500_v31 = vpack.c.bf16 %v4493_v45, %v4492_v29  ;;  %v5597_v47 = vpop.permute.xlu0 %5596 }
 0xc07   : > { %v5599_v52 = vunpack.i.h.bf16 %v5597_v47  ;;  %v5598_v33 = vunpack.i.l.bf16 %v5597_v47 }
 0xc08   : > { %5532 = vmatprep.mubr.msk.bf16.mxu0 %vm513_vm0, %v4500_v31 }
 0xc09   : > { %v4488_v32 = vsel %vm4482_vm4, %v4479_v63, %v5599_v52  ;;  %v4487_v40 = vsel %vm4482_vm4, %v4478_v28, %v5598_v33 }
 0xc37   : > { %v5602_v37 = vpop.permute.xlu1 %5601 }
 0xc38   : > { %v5604_v58 = vunpack.i.h.bf16 %v5602_v37  ;;  %v5603_v14 = vunpack.i.l.bf16 %v5602_v37  ;;  %v4605_v37 = vadd.s32 56, %v4598_v3 }
 0xc3a   : > { %v4495_v25 = vsel %vm4491_vm5, %v4486_v48, %v5604_v58  ;;  %v4494_v43 = vsel %vm4491_vm5, %v4485_v18, %v5603_v14  ;;  %v4638_v58 = vand.u32 7, %v4602_v56  ;;  %v4659_v14 = vand.u32 7, %v4605_v37 }
 0xc3b   : > { %v4501_v44 = vpack.c.bf16 %v4495_v25, %v4494_v43  ;;  %v5607_v0 = vpop.permute.xlu1 %5606  ;;  %v4645_v18 = vand.u32 7, %v4603_v34 }
 0xc3c   : > { %v5609_v55 = vunpack.i.h.bf16 %v5607_v0  ;;  %v5608_v15 = vunpack.i.l.bf16 %v5607_v0  ;;  %vm4706_vm11 = vcmp.eq.s32.totalorder %v4638_v58, 0  ;;  %vm4709_vm12 = vcmp.eq.s32.totalorder %v4659_v14, 0 }
 0xc3d   : > { %5533 = vmatmul.mubr.msk.bf16.vlgmr.msra.gmra.mrb[136].mxu0 %vm513_vm0, %v4501_v44  ;;  %vm4707_vm13 = vcmp.eq.s32.totalorder %v4645_v18, 0 }
 0xc3e   : > { %v4490_v17 = vsel %vm4482_vm4, %v4481_v16, %v5609_v55  ;;  %v4489_v36 = vsel %vm4482_vm4, %v4480_v30, %v5608_v15 }
 0xc3f   : > { %v5612_v19 = vpop.permute.xlu0 %5611 }
 0xc40   : > { %v5614_v41 = vunpack.i.h.bf16 %v5612_v19  ;;  %v5613_v54 = vunpack.i.l.bf16 %v5612_v19 }
 0xc42   : > { %v4497_v62 = vsel %vm4491_vm5, %v4488_v32, %v5614_v41  ;;  %v4496_v49 = vsel %vm4491_vm5, %v4487_v40, %v5613_v54 }
 0xc43   : > { %v4502_v11 = vpack.c.bf16 %v4497_v62, %v4496_v49 }
 0xc45   : > { %5536 = vmatprep.mubr.msk.bf16.mxu0 %vm513_vm0, %v4502_v11 }
 0xc4b   : > { %v5617_v59 = vpop.permute.xlu1 %5616 }
 0xc4c   : > { %v5619_v53 = vunpack.i.h.bf16 %v5617_v59  ;;  %v5618_v7 = vunpack.i.l.bf16 %v5617_v59 }
 0xc4e   : > { %v4499_v38 = vsel %vm4491_vm5, %v4490_v17, %v5619_v53  ;;  %v4498_v27 = vsel %vm4491_vm5, %v4489_v36, %v5618_v7 }
 0xc4f   : > { %v4503_v4 = vpack.c.bf16 %v4499_v38, %v4498_v27 }
 0xc51   : > { %5537 = vmatmul.mubr.msk.bf16.gmra.mrb[140].mxu0 %vm513_vm0, %v4503_v4 }
 0xd10   : > { %v5534_v22 = vpop.f32.mrb[136].mxu0 }
 0xd11   : > { %v4728_v35 = vsel %vm4704_vm6, 0.0, %v5534_v22  ;;  %v4566_v39 = vpop.f32.mrb[137].mxu0 }
 0xd12   : > { %v4743_v23 = vadd.f32 %v4953_v24, %v4728_v35  ;;  %v4726_v45 = vsel %vm4702_vm7, 0.0, %v4566_v39  ;;  %v5535_v29 = vpop.f32.mrb[138].mxu0 }
 0xd13   : > { %v4741_v31 = vadd.f32 %v4953_v24, %v4726_v45  ;;  %v4729_v46 = vsel %vm4705_vm8, 0.0, %v5535_v29  ;;  %v4569_v50 = vpop.f32.mrb[139].mxu0 }
 0xd14   : > { %4751 = vst.msk [vmem:[%s6928_s22 + $0x10] sm:$0xff] %vm513_vm0, %v4743_v23  ;;  %v4744_v51 = vadd.f32 %v4953_v24, %v4729_v46  ;;  %v4727_v61 = vsel %vm4703_vm9, 0.0, %v4569_v50 }
 0xd15   : > { %4749 = vst.msk [vmem:[%s6928_s22] sm:$0xff] %vm513_vm0, %v4741_v31  ;;  %v4742_v5 = vadd.f32 %v4953_v24, %v4727_v61 }
 0xd16   : > { %4752 = vst.msk [vmem:[%s6928_s22 + $0x18] sm:$0xff] %vm513_vm0, %v4744_v51 }
 0xd17   : > { %4750 = vst.msk [vmem:[%s6928_s22 + $0x8] sm:$0xff] %vm513_vm0, %v4742_v5 }
 0xd24   : > { %v5538_v48 = vpop.f32.mrb[140].mxu0 }
 0xd25   : > { %v4732_v47 = vsel %vm4708_vm10, 0.0, %v5538_v48  ;;  %v4582_v25 = vpop.f32.mrb[141].mxu0 }
 0xd26   : > { %v4747_v43 = vadd.f32 %v4953_v24, %v4732_v47  ;;  %v4730_v44 = vsel %vm4706_vm11, 0.0, %v4582_v25  ;;  %v5539_v1 = vpop.f32.mrb[142].mxu0 }
 0xd27   : > { %v4745_v12 = vadd.f32 %v4953_v24, %v4730_v44  ;;  %v4733_v52 = vsel %vm4709_vm12, 0.0, %v5539_v1  ;;  %v4585_v33 = vpop.f32.mrb[143].mxu0 }
 0xd28   : > { %4755 = vst.msk [vmem:[%s6928_s22 + $0x30] sm:$0xff] %vm513_vm0, %v4747_v43  ;;  %v4748_v19 = vadd.f32 %v4953_v24, %v4733_v52  ;;  %v4731_v63 = vsel %vm4707_vm13, 0.0, %v4585_v33 }
 0xd29   : > { %4753 = vst.msk [vmem:[%s6928_s22 + $0x20] sm:$0xff] %vm513_vm0, %v4745_v12  ;;  %v4746_v28 = vadd.f32 %v4953_v24, %v4731_v63 }
 0xd2a   : > { %4756 = vst.msk [vmem:[%s6928_s22 + $0x38] sm:$0xff] %vm513_vm0, %v4748_v19 }
 0xd2b   : > { %4754 = vst.msk [vmem:[%s6928_s22 + $0x28] sm:$0xff] %vm513_vm0, %v4746_v28 }
 0xd2c PF: > { %s22_s21 = sadd.s32 1, %s5775_s21  }
 0xd2d   : > { %p19_p4 = scmp.ge.s32.totalorder %s22_s21, 6  }
 0xd2f   :  { %21 = sbr.rel (!%p19_p4) target bundleno = 1 (0x1), region = 104 }

</bundles_post_ra>
